<compile_context>
chip_gen: v7x
topology: tpu7x:2x2x1
jax: 0.10.0
libtpu: 0.0.40
codegen_flags: <defaults>
</compile_context>

<pallas_src>
import functools

import jax
import jax.numpy as jnp
import numpy as np
from jax import lax
from jax.experimental import pallas as pl
from jax.experimental.pallas import tpu as pltpu

NPAD = 128  # flattened padded spatial length, padded up to one full lane width


# --------------------------------------------------------------------------- #
# Fused kernel: Linear + SiLU + Conv3x3 + SiLU + Conv3x3 for one batch element
# --------------------------------------------------------------------------- #
def _decoder_kernel(x_ref, wl_ref, bl_ref, w1_ref, b1_ref, w2_ref, b2_ref,
                    mask_ref, o_ref, mid_ref, *, h_dim, C1, NC, WP, PW, SHIFT):
    b = pl.program_id(0)

    # ---- Linear + SiLU, produced directly in the padded flat layout --------
    # wl_ref[k] is (h_dim, NPAD), already scattered/zero-padded.  Scalar
    # broadcast accumulation on the VPU; 4 partial sums break the serial
    # dependency chain of 32 adds (the mul/add throughput is tiny anyway).
    n_par = 4
    parts = [bl_ref[...]] + [jnp.zeros((h_dim, NPAD), jnp.float32)
                             for _ in range(n_par - 1)]
    for k in range(h_dim):
        parts[k % n_par] = parts[k % n_par] + x_ref[b, k] * wl_ref[k]
    acc = parts[0]
    for p in range(1, n_par):
        acc = acc + parts[p]
    fp = acc * jax.nn.sigmoid(acc)                        # SiLU; halo stays 0
    fp_b = fp.astype(jnp.bfloat16)                        # bf16 MXU operand

    # ---- Conv1 3x3 (padding=1): 9 tap matmuls, f32 accumulation ------------
    # Accumulator is seeded by the pre-broadcast bias (C1, PW).
    acc1 = b1_ref[...]
    for dy in range(3):
        for dx in range(3):
            off = dy * WP + dx
            acc1 = acc1 + jnp.dot(w1_ref[dy * 3 + dx], fp_b[:, off:off + PW],
                                  preferred_element_type=jnp.float32)
    s1 = acc1 * jax.nn.sigmoid(acc1)                      # SiLU

    # Re-pad the intermediate into the same flat layout through a tiny VMEM
    # scratch.  Zeroing is only 2 vregs and is redone every step so the kernel
    # stays correct when the batch axis is sharded across cores ("parallel").
    mid_ref[...] = jnp.zeros_like(mid_ref)
    mid_ref[:, SHIFT:SHIFT + PW] = s1 * mask_ref[...]     # kill wrap columns
    mid_b = mid_ref[...].astype(jnp.bfloat16)

    # ---- Conv2 3x3 (padding=1): 9 tap matmuls -------------------------------
    acc2 = b2_ref[...]
    for dy in range(3):
        for dx in range(3):
            off = dy * WP + dx
            acc2 = acc2 + jnp.dot(w2_ref[dy * 3 + dx], mid_b[:, off:off + PW],
                                  preferred_element_type=jnp.float32)

    # Lane-dense output store: (NC, PW) with PW=104 lanes, one store per step.
    o_ref[0, :, :] = acc2


# --------------------------------------------------------------------------- #
# Wrapper: weight re-packing glue + single pallas_call + free crop to NCHW
# --------------------------------------------------------------------------- #
@functools.partial(jax.jit, static_argnums=(2, 3))
def egocentric_decoder_forward(x, params, num_classes, hw):
    H, W = hw
    B, h_dim = x.shape
    C1 = h_dim // 2
    NC = num_classes
    HP, WP = H + 2, W + 2
    SHIFT = WP + 1                    # flat offset of padded pixel (1, 1)
    PW = NPAD - (2 * WP + 2)          # tap-slice width (covers all valid cols)
    assert HP * WP <= NPAD and H * WP <= PW, "spatial size too large for layout"

    W_lin, b_lin = params["W_lin"], params["b_lin"]   # (h*H*W, h), (h*H*W,)
    W_c1, b_c1 = params["W_c1"], params["b_c1"]       # (C1, h, 3, 3), (C1,)
    W_c2, b_c2 = params["W_c2"], params["b_c2"]       # (NC, C1, 3, 3), (NC,)

    # Linear weight scattered into the zero-padded flat layout, ordered
    # (k, c, q) so the kernel does per-k scalar-broadcast accumulation.
    Wr = W_lin.reshape(h_dim, H, W, h_dim).transpose(3, 0, 1, 2)   # (k,c,h,w)
    WL = jnp.zeros((h_dim, h_dim, HP, WP), jnp.float32)
    WL = WL.at[:, :, 1:1 + H, 1:1 + W].set(Wr)
    WL = WL.reshape(h_dim, h_dim, HP * WP)
    WL = jnp.pad(WL, ((0, 0), (0, 0), (0, NPAD - HP * WP)))

    br = b_lin.reshape(h_dim, H, W)
    bL = jnp.zeros((h_dim, HP, WP), jnp.float32)
    bL = bL.at[:, 1:1 + H, 1:1 + W].set(br)
    bL = bL.reshape(h_dim, HP * WP)
    bL = jnp.pad(bL, ((0, 0), (0, NPAD - HP * WP)))

    # Conv weights: (O, I, 3, 3) -> (tap = dy*3+dx, O, I), bf16 MXU operands.
    w1t = W_c1.transpose(2, 3, 0, 1).reshape(9, C1, h_dim).astype(jnp.bfloat16)
    w2t = W_c2.transpose(2, 3, 0, 1).reshape(9, NC, C1).astype(jnp.bfloat16)
    # Biases pre-broadcast to the tap-slice width so the kernel can seed its
    # accumulators with a plain load (no in-kernel broadcast or extra add).
    b1c = jnp.broadcast_to(b_c1.reshape(C1, 1).astype(jnp.float32), (C1, PW))
    b2c = jnp.broadcast_to(b_c2.reshape(NC, 1).astype(jnp.float32), (NC, PW))

    # Validity mask over flat output columns (1 where h < H and w < W).
    q = np.arange(PW)
    mask_np = ((q % WP < W) & (q < H * WP)).astype(np.float32).reshape(1, PW)
    mask = jnp.asarray(mask_np)

    kernel = functools.partial(_decoder_kernel, h_dim=h_dim, C1=C1, NC=NC,
                               WP=WP, PW=PW, SHIFT=SHIFT)

    out_flat = pl.pallas_call(
        kernel,
        out_shape=jax.ShapeDtypeStruct((B, NC, PW), jnp.float32),
        grid=(B,),
        in_specs=[
            pl.BlockSpec(memory_space=pltpu.MemorySpace.SMEM),        # x (scalars)
            pl.BlockSpec((h_dim, h_dim, NPAD), lambda b: (0, 0, 0)),  # WL
            pl.BlockSpec((h_dim, NPAD), lambda b: (0, 0)),            # bL
            pl.BlockSpec((9, C1, h_dim), lambda b: (0, 0, 0)),        # conv1 W
            pl.BlockSpec((C1, PW), lambda b: (0, 0)),                 # conv1 b
            pl.BlockSpec((9, NC, C1), lambda b: (0, 0, 0)),           # conv2 W
            pl.BlockSpec((NC, PW), lambda b: (0, 0)),                 # conv2 b
            pl.BlockSpec((1, PW), lambda b: (0, 0)),                  # mask
        ],
        out_specs=pl.BlockSpec((1, NC, PW), lambda b: (b, 0, 0)),
        scratch_shapes=[pltpu.VMEM((C1, NPAD), jnp.float32)],
        compiler_params=pltpu.CompilerParams(dimension_semantics=("parallel",)),
    )(x, WL, bL, w1t, b1c, w2t, b2c, mask)

    # Free crop (reshape + slice, no transpose): (B, NC, PW) -> (B, NC, H, W).
    out = out_flat[:, :, :H * WP].reshape(B, NC, H, WP)[:, :, :, :W]
    return out


# --------------------------------------------------------------------------- #
# Pure-JAX reference (mirrors the PyTorch forward, NCHW, f32) for verification
# --------------------------------------------------------------------------- #
def ref_forward(x, params, h_dim, H, W):
    B = x.shape[0]
    y = x @ params["W_lin"].T + params["b_lin"]
    y = jax.nn.silu(y)
    f = y.reshape(B, h_dim, H, W)
    f = lax.conv_general_dilated(f, params["W_c1"], (1, 1), "SAME",
                                 dimension_numbers=("NCHW", "OIHW", "NCHW"))
    f = jax.nn.silu(f + params["b_c1"][None, :, None, None])
    out = lax.conv_general_dilated(f, params["W_c2"], (1, 1), "SAME",
                                   dimension_numbers=("NCHW", "OIHW", "NCHW"))
    return out + params["b_c2"][None, :, None, None]


if __name__ == "__main__":
    B, h_dim, H, W, NC = 2, 32, 9, 9, 8   # num_classes=8, output_shape=(8,(9,9))
    C1 = h_dim // 2

    key = jax.random.PRNGKey(0)
    ks = jax.random.split(key, 7)
    params = {
        "W_lin": jax.random.normal(ks[0], (h_dim * H * W, h_dim), jnp.float32)
                 / np.sqrt(h_dim),
        "b_lin": 0.01 * jax.random.normal(ks[1], (h_dim * H * W,), jnp.float32),
        "W_c1": jax.random.normal(ks[2], (C1, h_dim, 3, 3), jnp.float32)
                / np.sqrt(9 * h_dim),
        "b_c1": 0.01 * jax.random.normal(ks[3], (C1,), jnp.float32),
        "W_c2": jax.random.normal(ks[4], (NC, C1, 3, 3), jnp.float32)
                / np.sqrt(9 * C1),
        "b_c2": 0.01 * jax.random.normal(ks[5], (NC,), jnp.float32),
    }
    x = jax.random.normal(ks[6], (B, h_dim), jnp.float32)

    out = egocentric_decoder_forward(x, params, NC, (H, W))
    out = jax.block_until_ready(out)

    ref = ref_forward(x, params, h_dim, H, W)
    assert out.shape == (B, NC, H, W), out.shape
    # bf16 MXU operands vs f32 reference -> 2e-2 tolerance.
    np.testing.assert_allclose(np.asarray(out), np.asarray(ref),
                               rtol=2e-2, atol=2e-2)
    print("KERNEL_OK")
</pallas_src>

<mosaic_0001>
module attributes {stable_mosaic.version = 11 : i64} {
  func.func @_decoder_kernel(%arg0: i32, %arg1: memref<2x32xf32, #tpu.memory_space<smem>>, %arg2: memref<32x32x128xf32, #tpu.memory_space<vmem>>, %arg3: memref<32x128xf32, #tpu.memory_space<vmem>>, %arg4: memref<9x16x32xbf16, #tpu.memory_space<vmem>>, %arg5: memref<16x104xf32, #tpu.memory_space<vmem>>, %arg6: memref<9x8x16xbf16, #tpu.memory_space<vmem>>, %arg7: memref<8x104xf32, #tpu.memory_space<vmem>>, %arg8: memref<1x104xf32, #tpu.memory_space<vmem>>, %arg9: memref<1x8x104xf32, #tpu.memory_space<vmem>>, %arg10: memref<16x128xf32, #tpu.memory_space<vmem>>) attributes {dimension_semantics = [#tpu.dimension_semantics<parallel>], iteration_bounds = array<i64: 2>, scalar_prefetch = 0 : i64, scratch_operands = 1 : i64, tpu.core_type = #tpu.core_type<tc>, window_params = [{transform_indices = @transform_0, window_bounds = array<i64: 2, 32>}, {pipeline_mode = #tpu.pipeline_mode<synchronous>, transform_indices = @transform_1, window_bounds = array<i64: 32, 32, 128>}, {pipeline_mode = #tpu.pipeline_mode<synchronous>, transform_indices = @transform_2, window_bounds = array<i64: 32, 128>}, {pipeline_mode = #tpu.pipeline_mode<synchronous>, transform_indices = @transform_3, window_bounds = array<i64: 9, 16, 32>}, {pipeline_mode = #tpu.pipeline_mode<synchronous>, transform_indices = @transform_4, window_bounds = array<i64: 16, 104>}, {pipeline_mode = #tpu.pipeline_mode<synchronous>, transform_indices = @transform_5, window_bounds = array<i64: 9, 8, 16>}, {pipeline_mode = #tpu.pipeline_mode<synchronous>, transform_indices = @transform_6, window_bounds = array<i64: 8, 104>}, {pipeline_mode = #tpu.pipeline_mode<synchronous>, transform_indices = @transform_7, window_bounds = array<i64: 1, 104>}, {transform_indices = @transform_8, window_bounds = array<i64: 1, 8, 104>}]} {
    %c0 = arith.constant 0 : index
    %c0_0 = arith.constant 0 : index
    %0 = vector.load %arg3[%c0, %c0_0] : memref<32x128xf32, #tpu.memory_space<vmem>>, vector<32x128xf32>
    %cst = arith.constant 0.000000e+00 : f32
    %1 = vector.broadcast %cst : f32 to vector<32x128xf32>
    %cst_1 = arith.constant 0.000000e+00 : f32
    %2 = vector.broadcast %cst_1 : f32 to vector<32x128xf32>
    %cst_2 = arith.constant 0.000000e+00 : f32
    %3 = vector.broadcast %cst_2 : f32 to vector<32x128xf32>
    %4 = arith.index_cast %arg0 : i32 to index
    %c0_3 = arith.constant 0 : index
    %5 = memref.load %arg1[%4, %c0_3] : memref<2x32xf32, #tpu.memory_space<smem>>
    %c0_4 = arith.constant 0 : index
    %c0_5 = arith.constant 0 : index
    %c0_6 = arith.constant 0 : index
    %6 = vector.load %arg2[%c0_4, %c0_5, %c0_6] : memref<32x32x128xf32, #tpu.memory_space<vmem>>, vector<1x32x128xf32>
    %7 = vector.shape_cast %6 : vector<1x32x128xf32> to vector<32x128xf32>
    %8 = vector.broadcast %5 : f32 to vector<32x128xf32>
    %9 = arith.mulf %8, %7 : vector<32x128xf32>
    %10 = arith.addf %0, %9 : vector<32x128xf32>
    %11 = arith.index_cast %arg0 : i32 to index
    %c1 = arith.constant 1 : index
    %12 = memref.load %arg1[%11, %c1] : memref<2x32xf32, #tpu.memory_space<smem>>
    %c1_7 = arith.constant 1 : index
    %c0_8 = arith.constant 0 : index
    %c0_9 = arith.constant 0 : index
    %13 = vector.load %arg2[%c1_7, %c0_8, %c0_9] : memref<32x32x128xf32, #tpu.memory_space<vmem>>, vector<1x32x128xf32>
    %14 = vector.shape_cast %13 : vector<1x32x128xf32> to vector<32x128xf32>
    %15 = vector.broadcast %12 : f32 to vector<32x128xf32>
    %16 = arith.mulf %15, %14 : vector<32x128xf32>
    %17 = arith.addf %1, %16 : vector<32x128xf32>
    %18 = arith.index_cast %arg0 : i32 to index
    %c2 = arith.constant 2 : index
    %19 = memref.load %arg1[%18, %c2] : memref<2x32xf32, #tpu.memory_space<smem>>
    %c2_10 = arith.constant 2 : index
    %c0_11 = arith.constant 0 : index
    %c0_12 = arith.constant 0 : index
    %20 = vector.load %arg2[%c2_10, %c0_11, %c0_12] : memref<32x32x128xf32, #tpu.memory_space<vmem>>, vector<1x32x128xf32>
    %21 = vector.shape_cast %20 : vector<1x32x128xf32> to vector<32x128xf32>
    %22 = vector.broadcast %19 : f32 to vector<32x128xf32>
    %23 = arith.mulf %22, %21 : vector<32x128xf32>
    %24 = arith.addf %2, %23 : vector<32x128xf32>
    %25 = arith.index_cast %arg0 : i32 to index
    %c3 = arith.constant 3 : index
    %26 = memref.load %arg1[%25, %c3] : memref<2x32xf32, #tpu.memory_space<smem>>
    %c3_13 = arith.constant 3 : index
    %c0_14 = arith.constant 0 : index
    %c0_15 = arith.constant 0 : index
    %27 = vector.load %arg2[%c3_13, %c0_14, %c0_15] : memref<32x32x128xf32, #tpu.memory_space<vmem>>, vector<1x32x128xf32>
    %28 = vector.shape_cast %27 : vector<1x32x128xf32> to vector<32x128xf32>
    %29 = vector.broadcast %26 : f32 to vector<32x128xf32>
    %30 = arith.mulf %29, %28 : vector<32x128xf32>
    %31 = arith.addf %3, %30 : vector<32x128xf32>
    %32 = arith.index_cast %arg0 : i32 to index
    %c4 = arith.constant 4 : index
    %33 = memref.load %arg1[%32, %c4] : memref<2x32xf32, #tpu.memory_space<smem>>
    %c4_16 = arith.constant 4 : index
    %c0_17 = arith.constant 0 : index
    %c0_18 = arith.constant 0 : index
    %34 = vector.load %arg2[%c4_16, %c0_17, %c0_18] : memref<32x32x128xf32, #tpu.memory_space<vmem>>, vector<1x32x128xf32>
    %35 = vector.shape_cast %34 : vector<1x32x128xf32> to vector<32x128xf32>
    %36 = vector.broadcast %33 : f32 to vector<32x128xf32>
    %37 = arith.mulf %36, %35 : vector<32x128xf32>
    %38 = arith.addf %10, %37 : vector<32x128xf32>
    %39 = arith.index_cast %arg0 : i32 to index
    %c5 = arith.constant 5 : index
    %40 = memref.load %arg1[%39, %c5] : memref<2x32xf32, #tpu.memory_space<smem>>
    %c5_19 = arith.constant 5 : index
    %c0_20 = arith.constant 0 : index
    %c0_21 = arith.constant 0 : index
    %41 = vector.load %arg2[%c5_19, %c0_20, %c0_21] : memref<32x32x128xf32, #tpu.memory_space<vmem>>, vector<1x32x128xf32>
    %42 = vector.shape_cast %41 : vector<1x32x128xf32> to vector<32x128xf32>
    %43 = vector.broadcast %40 : f32 to vector<32x128xf32>
    %44 = arith.mulf %43, %42 : vector<32x128xf32>
    %45 = arith.addf %17, %44 : vector<32x128xf32>
    %46 = arith.index_cast %arg0 : i32 to index
    %c6 = arith.constant 6 : index
    %47 = memref.load %arg1[%46, %c6] : memref<2x32xf32, #tpu.memory_space<smem>>
    %c6_22 = arith.constant 6 : index
    %c0_23 = arith.constant 0 : index
    %c0_24 = arith.constant 0 : index
    %48 = vector.load %arg2[%c6_22, %c0_23, %c0_24] : memref<32x32x128xf32, #tpu.memory_space<vmem>>, vector<1x32x128xf32>
    %49 = vector.shape_cast %48 : vector<1x32x128xf32> to vector<32x128xf32>
    %50 = vector.broadcast %47 : f32 to vector<32x128xf32>
    %51 = arith.mulf %50, %49 : vector<32x128xf32>
    %52 = arith.addf %24, %51 : vector<32x128xf32>
    %53 = arith.index_cast %arg0 : i32 to index
    %c7 = arith.constant 7 : index
    %54 = memref.load %arg1[%53, %c7] : memref<2x32xf32, #tpu.memory_space<smem>>
    %c7_25 = arith.constant 7 : index
    %c0_26 = arith.constant 0 : index
    %c0_27 = arith.constant 0 : index
    %55 = vector.load %arg2[%c7_25, %c0_26, %c0_27] : memref<32x32x128xf32, #tpu.memory_space<vmem>>, vector<1x32x128xf32>
    %56 = vector.shape_cast %55 : vector<1x32x128xf32> to vector<32x128xf32>
    %57 = vector.broadcast %54 : f32 to vector<32x128xf32>
    %58 = arith.mulf %57, %56 : vector<32x128xf32>
    %59 = arith.addf %31, %58 : vector<32x128xf32>
    %60 = arith.index_cast %arg0 : i32 to index
    %c8 = arith.constant 8 : index
    %61 = memref.load %arg1[%60, %c8] : memref<2x32xf32, #tpu.memory_space<smem>>
    %c8_28 = arith.constant 8 : index
    %c0_29 = arith.constant 0 : index
    %c0_30 = arith.constant 0 : index
    %62 = vector.load %arg2[%c8_28, %c0_29, %c0_30] : memref<32x32x128xf32, #tpu.memory_space<vmem>>, vector<1x32x128xf32>
    %63 = vector.shape_cast %62 : vector<1x32x128xf32> to vector<32x128xf32>
    %64 = vector.broadcast %61 : f32 to vector<32x128xf32>
    %65 = arith.mulf %64, %63 : vector<32x128xf32>
    %66 = arith.addf %38, %65 : vector<32x128xf32>
    %67 = arith.index_cast %arg0 : i32 to index
    %c9 = arith.constant 9 : index
    %68 = memref.load %arg1[%67, %c9] : memref<2x32xf32, #tpu.memory_space<smem>>
    %c9_31 = arith.constant 9 : index
    %c0_32 = arith.constant 0 : index
    %c0_33 = arith.constant 0 : index
    %69 = vector.load %arg2[%c9_31, %c0_32, %c0_33] : memref<32x32x128xf32, #tpu.memory_space<vmem>>, vector<1x32x128xf32>
    %70 = vector.shape_cast %69 : vector<1x32x128xf32> to vector<32x128xf32>
    %71 = vector.broadcast %68 : f32 to vector<32x128xf32>
    %72 = arith.mulf %71, %70 : vector<32x128xf32>
    %73 = arith.addf %45, %72 : vector<32x128xf32>
    %74 = arith.index_cast %arg0 : i32 to index
    %c10 = arith.constant 10 : index
    %75 = memref.load %arg1[%74, %c10] : memref<2x32xf32, #tpu.memory_space<smem>>
    %c10_34 = arith.constant 10 : index
    %c0_35 = arith.constant 0 : index
    %c0_36 = arith.constant 0 : index
    %76 = vector.load %arg2[%c10_34, %c0_35, %c0_36] : memref<32x32x128xf32, #tpu.memory_space<vmem>>, vector<1x32x128xf32>
    %77 = vector.shape_cast %76 : vector<1x32x128xf32> to vector<32x128xf32>
    %78 = vector.broadcast %75 : f32 to vector<32x128xf32>
    %79 = arith.mulf %78, %77 : vector<32x128xf32>
    %80 = arith.addf %52, %79 : vector<32x128xf32>
    %81 = arith.index_cast %arg0 : i32 to index
    %c11 = arith.constant 11 : index
    %82 = memref.load %arg1[%81, %c11] : memref<2x32xf32, #tpu.memory_space<smem>>
    %c11_37 = arith.constant 11 : index
    %c0_38 = arith.constant 0 : index
    %c0_39 = arith.constant 0 : index
    %83 = vector.load %arg2[%c11_37, %c0_38, %c0_39] : memref<32x32x128xf32, #tpu.memory_space<vmem>>, vector<1x32x128xf32>
    %84 = vector.shape_cast %83 : vector<1x32x128xf32> to vector<32x128xf32>
    %85 = vector.broadcast %82 : f32 to vector<32x128xf32>
    %86 = arith.mulf %85, %84 : vector<32x128xf32>
    %87 = arith.addf %59, %86 : vector<32x128xf32>
    %88 = arith.index_cast %arg0 : i32 to index
    %c12 = arith.constant 12 : index
    %89 = memref.load %arg1[%88, %c12] : memref<2x32xf32, #tpu.memory_space<smem>>
    %c12_40 = arith.constant 12 : index
    %c0_41 = arith.constant 0 : index
    %c0_42 = arith.constant 0 : index
    %90 = vector.load %arg2[%c12_40, %c0_41, %c0_42] : memref<32x32x128xf32, #tpu.memory_space<vmem>>, vector<1x32x128xf32>
    %91 = vector.shape_cast %90 : vector<1x32x128xf32> to vector<32x128xf32>
    %92 = vector.broadcast %89 : f32 to vector<32x128xf32>
    %93 = arith.mulf %92, %91 : vector<32x128xf32>
    %94 = arith.addf %66, %93 : vector<32x128xf32>
    %95 = arith.index_cast %arg0 : i32 to index
    %c13 = arith.constant 13 : index
    %96 = memref.load %arg1[%95, %c13] : memref<2x32xf32, #tpu.memory_space<smem>>
    %c13_43 = arith.constant 13 : index
    %c0_44 = arith.constant 0 : index
    %c0_45 = arith.constant 0 : index
    %97 = vector.load %arg2[%c13_43, %c0_44, %c0_45] : memref<32x32x128xf32, #tpu.memory_space<vmem>>, vector<1x32x128xf32>
    %98 = vector.shape_cast %97 : vector<1x32x128xf32> to vector<32x128xf32>
    %99 = vector.broadcast %96 : f32 to vector<32x128xf32>
    %100 = arith.mulf %99, %98 : vector<32x128xf32>
    %101 = arith.addf %73, %100 : vector<32x128xf32>
    %102 = arith.index_cast %arg0 : i32 to index
    %c14 = arith.constant 14 : index
    %103 = memref.load %arg1[%102, %c14] : memref<2x32xf32, #tpu.memory_space<smem>>
    %c14_46 = arith.constant 14 : index
    %c0_47 = arith.constant 0 : index
    %c0_48 = arith.constant 0 : index
    %104 = vector.load %arg2[%c14_46, %c0_47, %c0_48] : memref<32x32x128xf32, #tpu.memory_space<vmem>>, vector<1x32x128xf32>
    %105 = vector.shape_cast %104 : vector<1x32x128xf32> to vector<32x128xf32>
    %106 = vector.broadcast %103 : f32 to vector<32x128xf32>
    %107 = arith.mulf %106, %105 : vector<32x128xf32>
    %108 = arith.addf %80, %107 : vector<32x128xf32>
    %109 = arith.index_cast %arg0 : i32 to index
    %c15 = arith.constant 15 : index
    %110 = memref.load %arg1[%109, %c15] : memref<2x32xf32, #tpu.memory_space<smem>>
    %c15_49 = arith.constant 15 : index
    %c0_50 = arith.constant 0 : index
    %c0_51 = arith.constant 0 : index
    %111 = vector.load %arg2[%c15_49, %c0_50, %c0_51] : memref<32x32x128xf32, #tpu.memory_space<vmem>>, vector<1x32x128xf32>
    %112 = vector.shape_cast %111 : vector<1x32x128xf32> to vector<32x128xf32>
    %113 = vector.broadcast %110 : f32 to vector<32x128xf32>
    %114 = arith.mulf %113, %112 : vector<32x128xf32>
    %115 = arith.addf %87, %114 : vector<32x128xf32>
    %116 = arith.index_cast %arg0 : i32 to index
    %c16 = arith.constant 16 : index
    %117 = memref.load %arg1[%116, %c16] : memref<2x32xf32, #tpu.memory_space<smem>>
    %c16_52 = arith.constant 16 : index
    %c0_53 = arith.constant 0 : index
    %c0_54 = arith.constant 0 : index
    %118 = vector.load %arg2[%c16_52, %c0_53, %c0_54] : memref<32x32x128xf32, #tpu.memory_space<vmem>>, vector<1x32x128xf32>
    %119 = vector.shape_cast %118 : vector<1x32x128xf32> to vector<32x128xf32>
    %120 = vector.broadcast %117 : f32 to vector<32x128xf32>
    %121 = arith.mulf %120, %119 : vector<32x128xf32>
    %122 = arith.addf %94, %121 : vector<32x128xf32>
    %123 = arith.index_cast %arg0 : i32 to index
    %c17 = arith.constant 17 : index
    %124 = memref.load %arg1[%123, %c17] : memref<2x32xf32, #tpu.memory_space<smem>>
    %c17_55 = arith.constant 17 : index
    %c0_56 = arith.constant 0 : index
    %c0_57 = arith.constant 0 : index
    %125 = vector.load %arg2[%c17_55, %c0_56, %c0_57] : memref<32x32x128xf32, #tpu.memory_space<vmem>>, vector<1x32x128xf32>
    %126 = vector.shape_cast %125 : vector<1x32x128xf32> to vector<32x128xf32>
    %127 = vector.broadcast %124 : f32 to vector<32x128xf32>
    %128 = arith.mulf %127, %126 : vector<32x128xf32>
    %129 = arith.addf %101, %128 : vector<32x128xf32>
    %130 = arith.index_cast %arg0 : i32 to index
    %c18 = arith.constant 18 : index
    %131 = memref.load %arg1[%130, %c18] : memref<2x32xf32, #tpu.memory_space<smem>>
    %c18_58 = arith.constant 18 : index
    %c0_59 = arith.constant 0 : index
    %c0_60 = arith.constant 0 : index
    %132 = vector.load %arg2[%c18_58, %c0_59, %c0_60] : memref<32x32x128xf32, #tpu.memory_space<vmem>>, vector<1x32x128xf32>
    %133 = vector.shape_cast %132 : vector<1x32x128xf32> to vector<32x128xf32>
    %134 = vector.broadcast %131 : f32 to vector<32x128xf32>
    %135 = arith.mulf %134, %133 : vector<32x128xf32>
    %136 = arith.addf %108, %135 : vector<32x128xf32>
    %137 = arith.index_cast %arg0 : i32 to index
    %c19 = arith.constant 19 : index
    %138 = memref.load %arg1[%137, %c19] : memref<2x32xf32, #tpu.memory_space<smem>>
    %c19_61 = arith.constant 19 : index
    %c0_62 = arith.constant 0 : index
    %c0_63 = arith.constant 0 : index
    %139 = vector.load %arg2[%c19_61, %c0_62, %c0_63] : memref<32x32x128xf32, #tpu.memory_space<vmem>>, vector<1x32x128xf32>
    %140 = vector.shape_cast %139 : vector<1x32x128xf32> to vector<32x128xf32>
    %141 = vector.broadcast %138 : f32 to vector<32x128xf32>
    %142 = arith.mulf %141, %140 : vector<32x128xf32>
    %143 = arith.addf %115, %142 : vector<32x128xf32>
    %144 = arith.index_cast %arg0 : i32 to index
    %c20 = arith.constant 20 : index
    %145 = memref.load %arg1[%144, %c20] : memref<2x32xf32, #tpu.memory_space<smem>>
    %c20_64 = arith.constant 20 : index
    %c0_65 = arith.constant 0 : index
    %c0_66 = arith.constant 0 : index
    %146 = vector.load %arg2[%c20_64, %c0_65, %c0_66] : memref<32x32x128xf32, #tpu.memory_space<vmem>>, vector<1x32x128xf32>
    %147 = vector.shape_cast %146 : vector<1x32x128xf32> to vector<32x128xf32>
    %148 = vector.broadcast %145 : f32 to vector<32x128xf32>
    %149 = arith.mulf %148, %147 : vector<32x128xf32>
    %150 = arith.addf %122, %149 : vector<32x128xf32>
    %151 = arith.index_cast %arg0 : i32 to index
    %c21 = arith.constant 21 : index
    %152 = memref.load %arg1[%151, %c21] : memref<2x32xf32, #tpu.memory_space<smem>>
    %c21_67 = arith.constant 21 : index
    %c0_68 = arith.constant 0 : index
    %c0_69 = arith.constant 0 : index
    %153 = vector.load %arg2[%c21_67, %c0_68, %c0_69] : memref<32x32x128xf32, #tpu.memory_space<vmem>>, vector<1x32x128xf32>
    %154 = vector.shape_cast %153 : vector<1x32x128xf32> to vector<32x128xf32>
    %155 = vector.broadcast %152 : f32 to vector<32x128xf32>
    %156 = arith.mulf %155, %154 : vector<32x128xf32>
    %157 = arith.addf %129, %156 : vector<32x128xf32>
    %158 = arith.index_cast %arg0 : i32 to index
    %c22 = arith.constant 22 : index
    %159 = memref.load %arg1[%158, %c22] : memref<2x32xf32, #tpu.memory_space<smem>>
    %c22_70 = arith.constant 22 : index
    %c0_71 = arith.constant 0 : index
    %c0_72 = arith.constant 0 : index
    %160 = vector.load %arg2[%c22_70, %c0_71, %c0_72] : memref<32x32x128xf32, #tpu.memory_space<vmem>>, vector<1x32x128xf32>
    %161 = vector.shape_cast %160 : vector<1x32x128xf32> to vector<32x128xf32>
    %162 = vector.broadcast %159 : f32 to vector<32x128xf32>
    %163 = arith.mulf %162, %161 : vector<32x128xf32>
    %164 = arith.addf %136, %163 : vector<32x128xf32>
    %165 = arith.index_cast %arg0 : i32 to index
    %c23 = arith.constant 23 : index
    %166 = memref.load %arg1[%165, %c23] : memref<2x32xf32, #tpu.memory_space<smem>>
    %c23_73 = arith.constant 23 : index
    %c0_74 = arith.constant 0 : index
    %c0_75 = arith.constant 0 : index
    %167 = vector.load %arg2[%c23_73, %c0_74, %c0_75] : memref<32x32x128xf32, #tpu.memory_space<vmem>>, vector<1x32x128xf32>
    %168 = vector.shape_cast %167 : vector<1x32x128xf32> to vector<32x128xf32>
    %169 = vector.broadcast %166 : f32 to vector<32x128xf32>
    %170 = arith.mulf %169, %168 : vector<32x128xf32>
    %171 = arith.addf %143, %170 : vector<32x128xf32>
    %172 = arith.index_cast %arg0 : i32 to index
    %c24 = arith.constant 24 : index
    %173 = memref.load %arg1[%172, %c24] : memref<2x32xf32, #tpu.memory_space<smem>>
    %c24_76 = arith.constant 24 : index
    %c0_77 = arith.constant 0 : index
    %c0_78 = arith.constant 0 : index
    %174 = vector.load %arg2[%c24_76, %c0_77, %c0_78] : memref<32x32x128xf32, #tpu.memory_space<vmem>>, vector<1x32x128xf32>
    %175 = vector.shape_cast %174 : vector<1x32x128xf32> to vector<32x128xf32>
    %176 = vector.broadcast %173 : f32 to vector<32x128xf32>
    %177 = arith.mulf %176, %175 : vector<32x128xf32>
    %178 = arith.addf %150, %177 : vector<32x128xf32>
    %179 = arith.index_cast %arg0 : i32 to index
    %c25 = arith.constant 25 : index
    %180 = memref.load %arg1[%179, %c25] : memref<2x32xf32, #tpu.memory_space<smem>>
    %c25_79 = arith.constant 25 : index
    %c0_80 = arith.constant 0 : index
    %c0_81 = arith.constant 0 : index
    %181 = vector.load %arg2[%c25_79, %c0_80, %c0_81] : memref<32x32x128xf32, #tpu.memory_space<vmem>>, vector<1x32x128xf32>
    %182 = vector.shape_cast %181 : vector<1x32x128xf32> to vector<32x128xf32>
    %183 = vector.broadcast %180 : f32 to vector<32x128xf32>
    %184 = arith.mulf %183, %182 : vector<32x128xf32>
    %185 = arith.addf %157, %184 : vector<32x128xf32>
    %186 = arith.index_cast %arg0 : i32 to index
    %c26 = arith.constant 26 : index
    %187 = memref.load %arg1[%186, %c26] : memref<2x32xf32, #tpu.memory_space<smem>>
    %c26_82 = arith.constant 26 : index
    %c0_83 = arith.constant 0 : index
    %c0_84 = arith.constant 0 : index
    %188 = vector.load %arg2[%c26_82, %c0_83, %c0_84] : memref<32x32x128xf32, #tpu.memory_space<vmem>>, vector<1x32x128xf32>
    %189 = vector.shape_cast %188 : vector<1x32x128xf32> to vector<32x128xf32>
    %190 = vector.broadcast %187 : f32 to vector<32x128xf32>
    %191 = arith.mulf %190, %189 : vector<32x128xf32>
    %192 = arith.addf %164, %191 : vector<32x128xf32>
    %193 = arith.index_cast %arg0 : i32 to index
    %c27 = arith.constant 27 : index
    %194 = memref.load %arg1[%193, %c27] : memref<2x32xf32, #tpu.memory_space<smem>>
    %c27_85 = arith.constant 27 : index
    %c0_86 = arith.constant 0 : index
    %c0_87 = arith.constant 0 : index
    %195 = vector.load %arg2[%c27_85, %c0_86, %c0_87] : memref<32x32x128xf32, #tpu.memory_space<vmem>>, vector<1x32x128xf32>
    %196 = vector.shape_cast %195 : vector<1x32x128xf32> to vector<32x128xf32>
    %197 = vector.broadcast %194 : f32 to vector<32x128xf32>
    %198 = arith.mulf %197, %196 : vector<32x128xf32>
    %199 = arith.addf %171, %198 : vector<32x128xf32>
    %200 = arith.index_cast %arg0 : i32 to index
    %c28 = arith.constant 28 : index
    %201 = memref.load %arg1[%200, %c28] : memref<2x32xf32, #tpu.memory_space<smem>>
    %c28_88 = arith.constant 28 : index
    %c0_89 = arith.constant 0 : index
    %c0_90 = arith.constant 0 : index
    %202 = vector.load %arg2[%c28_88, %c0_89, %c0_90] : memref<32x32x128xf32, #tpu.memory_space<vmem>>, vector<1x32x128xf32>
    %203 = vector.shape_cast %202 : vector<1x32x128xf32> to vector<32x128xf32>
    %204 = vector.broadcast %201 : f32 to vector<32x128xf32>
    %205 = arith.mulf %204, %203 : vector<32x128xf32>
    %206 = arith.addf %178, %205 : vector<32x128xf32>
    %207 = arith.index_cast %arg0 : i32 to index
    %c29 = arith.constant 29 : index
    %208 = memref.load %arg1[%207, %c29] : memref<2x32xf32, #tpu.memory_space<smem>>
    %c29_91 = arith.constant 29 : index
    %c0_92 = arith.constant 0 : index
    %c0_93 = arith.constant 0 : index
    %209 = vector.load %arg2[%c29_91, %c0_92, %c0_93] : memref<32x32x128xf32, #tpu.memory_space<vmem>>, vector<1x32x128xf32>
    %210 = vector.shape_cast %209 : vector<1x32x128xf32> to vector<32x128xf32>
    %211 = vector.broadcast %208 : f32 to vector<32x128xf32>
    %212 = arith.mulf %211, %210 : vector<32x128xf32>
    %213 = arith.addf %185, %212 : vector<32x128xf32>
    %214 = arith.index_cast %arg0 : i32 to index
    %c30 = arith.constant 30 : index
    %215 = memref.load %arg1[%214, %c30] : memref<2x32xf32, #tpu.memory_space<smem>>
    %c30_94 = arith.constant 30 : index
    %c0_95 = arith.constant 0 : index
    %c0_96 = arith.constant 0 : index
    %216 = vector.load %arg2[%c30_94, %c0_95, %c0_96] : memref<32x32x128xf32, #tpu.memory_space<vmem>>, vector<1x32x128xf32>
    %217 = vector.shape_cast %216 : vector<1x32x128xf32> to vector<32x128xf32>
    %218 = vector.broadcast %215 : f32 to vector<32x128xf32>
    %219 = arith.mulf %218, %217 : vector<32x128xf32>
    %220 = arith.addf %192, %219 : vector<32x128xf32>
    %221 = arith.index_cast %arg0 : i32 to index
    %c31 = arith.constant 31 : index
    %222 = memref.load %arg1[%221, %c31] : memref<2x32xf32, #tpu.memory_space<smem>>
    %c31_97 = arith.constant 31 : index
    %c0_98 = arith.constant 0 : index
    %c0_99 = arith.constant 0 : index
    %223 = vector.load %arg2[%c31_97, %c0_98, %c0_99] : memref<32x32x128xf32, #tpu.memory_space<vmem>>, vector<1x32x128xf32>
    %224 = vector.shape_cast %223 : vector<1x32x128xf32> to vector<32x128xf32>
    %225 = vector.broadcast %222 : f32 to vector<32x128xf32>
    %226 = arith.mulf %225, %224 : vector<32x128xf32>
    %227 = arith.addf %199, %226 : vector<32x128xf32>
    %228 = arith.addf %206, %213 : vector<32x128xf32>
    %229 = arith.addf %228, %220 : vector<32x128xf32>
    %230 = arith.addf %229, %227 : vector<32x128xf32>
    %231 = arith.negf %230 : vector<32x128xf32>
    %232 = math.exp %231 : vector<32x128xf32>
    %cst_100 = arith.constant 1.000000e+00 : f32
    %233 = vector.broadcast %cst_100 : f32 to vector<32x128xf32>
    %234 = arith.addf %233, %232 : vector<32x128xf32>
    %235 = arith.divf %233, %234 : vector<32x128xf32>
    %236 = arith.mulf %230, %235 : vector<32x128xf32>
    %237 = arith.truncf %236 : vector<32x128xf32> to vector<32x128xbf16>
    %c0_101 = arith.constant 0 : index
    %c0_102 = arith.constant 0 : index
    %238 = vector.load %arg5[%c0_101, %c0_102] : memref<16x104xf32, #tpu.memory_space<vmem>>, vector<16x104xf32>
    %c0_103 = arith.constant 0 : index
    %c0_104 = arith.constant 0 : index
    %c0_105 = arith.constant 0 : index
    %239 = vector.load %arg4[%c0_103, %c0_104, %c0_105] : memref<9x16x32xbf16, #tpu.memory_space<vmem>>, vector<1x16x32xbf16>
    %240 = vector.shape_cast %239 : vector<1x16x32xbf16> to vector<16x32xbf16>
    %241 = vector.extract_strided_slice %237 {offsets = [0, 0], sizes = [32, 104], strides = [1, 1]} : vector<32x128xbf16> to vector<32x104xbf16>
    %cst_106 = arith.constant dense<0.000000e+00> : vector<16x104xf32>
    %242 = tpu.matmul %240, %241, %cst_106 {dimension_numbers = #tpu.dot_dimension_numbers<[1], [0], [0], [1], [0, 0, 1, 1], [], []>} : vector<16x32xbf16>, vector<32x104xbf16>, vector<16x104xf32> -> vector<16x104xf32>
    %243 = arith.addf %238, %242 : vector<16x104xf32>
    %c1_107 = arith.constant 1 : index
    %c0_108 = arith.constant 0 : index
    %c0_109 = arith.constant 0 : index
    %244 = vector.load %arg4[%c1_107, %c0_108, %c0_109] : memref<9x16x32xbf16, #tpu.memory_space<vmem>>, vector<1x16x32xbf16>
    %245 = vector.shape_cast %244 : vector<1x16x32xbf16> to vector<16x32xbf16>
    %246 = vector.extract_strided_slice %237 {offsets = [0, 1], sizes = [32, 104], strides = [1, 1]} : vector<32x128xbf16> to vector<32x104xbf16>
    %cst_110 = arith.constant dense<0.000000e+00> : vector<16x104xf32>
    %247 = tpu.matmul %245, %246, %cst_110 {dimension_numbers = #tpu.dot_dimension_numbers<[1], [0], [0], [1], [0, 0, 1, 1], [], []>} : vector<16x32xbf16>, vector<32x104xbf16>, vector<16x104xf32> -> vector<16x104xf32>
    %248 = arith.addf %243, %247 : vector<16x104xf32>
    %c2_111 = arith.constant 2 : index
    %c0_112 = arith.constant 0 : index
    %c0_113 = arith.constant 0 : index
    %249 = vector.load %arg4[%c2_111, %c0_112, %c0_113] : memref<9x16x32xbf16, #tpu.memory_space<vmem>>, vector<1x16x32xbf16>
    %250 = vector.shape_cast %249 : vector<1x16x32xbf16> to vector<16x32xbf16>
    %251 = vector.extract_strided_slice %237 {offsets = [0, 2], sizes = [32, 104], strides = [1, 1]} : vector<32x128xbf16> to vector<32x104xbf16>
    %cst_114 = arith.constant dense<0.000000e+00> : vector<16x104xf32>
    %252 = tpu.matmul %250, %251, %cst_114 {dimension_numbers = #tpu.dot_dimension_numbers<[1], [0], [0], [1], [0, 0, 1, 1], [], []>} : vector<16x32xbf16>, vector<32x104xbf16>, vector<16x104xf32> -> vector<16x104xf32>
    %253 = arith.addf %248, %252 : vector<16x104xf32>
    %c3_115 = arith.constant 3 : index
    %c0_116 = arith.constant 0 : index
    %c0_117 = arith.constant 0 : index
    %254 = vector.load %arg4[%c3_115, %c0_116, %c0_117] : memref<9x16x32xbf16, #tpu.memory_space<vmem>>, vector<1x16x32xbf16>
    %255 = vector.shape_cast %254 : vector<1x16x32xbf16> to vector<16x32xbf16>
    %256 = vector.extract_strided_slice %237 {offsets = [0, 11], sizes = [32, 104], strides = [1, 1]} : vector<32x128xbf16> to vector<32x104xbf16>
    %cst_118 = arith.constant dense<0.000000e+00> : vector<16x104xf32>
    %257 = tpu.matmul %255, %256, %cst_118 {dimension_numbers = #tpu.dot_dimension_numbers<[1], [0], [0], [1], [0, 0, 1, 1], [], []>} : vector<16x32xbf16>, vector<32x104xbf16>, vector<16x104xf32> -> vector<16x104xf32>
    %258 = arith.addf %253, %257 : vector<16x104xf32>
    %c4_119 = arith.constant 4 : index
    %c0_120 = arith.constant 0 : index
    %c0_121 = arith.constant 0 : index
    %259 = vector.load %arg4[%c4_119, %c0_120, %c0_121] : memref<9x16x32xbf16, #tpu.memory_space<vmem>>, vector<1x16x32xbf16>
    %260 = vector.shape_cast %259 : vector<1x16x32xbf16> to vector<16x32xbf16>
    %261 = vector.extract_strided_slice %237 {offsets = [0, 12], sizes = [32, 104], strides = [1, 1]} : vector<32x128xbf16> to vector<32x104xbf16>
    %cst_122 = arith.constant dense<0.000000e+00> : vector<16x104xf32>
    %262 = tpu.matmul %260, %261, %cst_122 {dimension_numbers = #tpu.dot_dimension_numbers<[1], [0], [0], [1], [0, 0, 1, 1], [], []>} : vector<16x32xbf16>, vector<32x104xbf16>, vector<16x104xf32> -> vector<16x104xf32>
    %263 = arith.addf %258, %262 : vector<16x104xf32>
    %c5_123 = arith.constant 5 : index
    %c0_124 = arith.constant 0 : index
    %c0_125 = arith.constant 0 : index
    %264 = vector.load %arg4[%c5_123, %c0_124, %c0_125] : memref<9x16x32xbf16, #tpu.memory_space<vmem>>, vector<1x16x32xbf16>
    %265 = vector.shape_cast %264 : vector<1x16x32xbf16> to vector<16x32xbf16>
    %266 = vector.extract_strided_slice %237 {offsets = [0, 13], sizes = [32, 104], strides = [1, 1]} : vector<32x128xbf16> to vector<32x104xbf16>
    %cst_126 = arith.constant dense<0.000000e+00> : vector<16x104xf32>
    %267 = tpu.matmul %265, %266, %cst_126 {dimension_numbers = #tpu.dot_dimension_numbers<[1], [0], [0], [1], [0, 0, 1, 1], [], []>} : vector<16x32xbf16>, vector<32x104xbf16>, vector<16x104xf32> -> vector<16x104xf32>
    %268 = arith.addf %263, %267 : vector<16x104xf32>
    %c6_127 = arith.constant 6 : index
    %c0_128 = arith.constant 0 : index
    %c0_129 = arith.constant 0 : index
    %269 = vector.load %arg4[%c6_127, %c0_128, %c0_129] : memref<9x16x32xbf16, #tpu.memory_space<vmem>>, vector<1x16x32xbf16>
    %270 = vector.shape_cast %269 : vector<1x16x32xbf16> to vector<16x32xbf16>
    %271 = vector.extract_strided_slice %237 {offsets = [0, 22], sizes = [32, 104], strides = [1, 1]} : vector<32x128xbf16> to vector<32x104xbf16>
    %cst_130 = arith.constant dense<0.000000e+00> : vector<16x104xf32>
    %272 = tpu.matmul %270, %271, %cst_130 {dimension_numbers = #tpu.dot_dimension_numbers<[1], [0], [0], [1], [0, 0, 1, 1], [], []>} : vector<16x32xbf16>, vector<32x104xbf16>, vector<16x104xf32> -> vector<16x104xf32>
    %273 = arith.addf %268, %272 : vector<16x104xf32>
    %c7_131 = arith.constant 7 : index
    %c0_132 = arith.constant 0 : index
    %c0_133 = arith.constant 0 : index
    %274 = vector.load %arg4[%c7_131, %c0_132, %c0_133] : memref<9x16x32xbf16, #tpu.memory_space<vmem>>, vector<1x16x32xbf16>
    %275 = vector.shape_cast %274 : vector<1x16x32xbf16> to vector<16x32xbf16>
    %276 = vector.extract_strided_slice %237 {offsets = [0, 23], sizes = [32, 104], strides = [1, 1]} : vector<32x128xbf16> to vector<32x104xbf16>
    %cst_134 = arith.constant dense<0.000000e+00> : vector<16x104xf32>
    %277 = tpu.matmul %275, %276, %cst_134 {dimension_numbers = #tpu.dot_dimension_numbers<[1], [0], [0], [1], [0, 0, 1, 1], [], []>} : vector<16x32xbf16>, vector<32x104xbf16>, vector<16x104xf32> -> vector<16x104xf32>
    %278 = arith.addf %273, %277 : vector<16x104xf32>
    %c8_135 = arith.constant 8 : index
    %c0_136 = arith.constant 0 : index
    %c0_137 = arith.constant 0 : index
    %279 = vector.load %arg4[%c8_135, %c0_136, %c0_137] : memref<9x16x32xbf16, #tpu.memory_space<vmem>>, vector<1x16x32xbf16>
    %280 = vector.shape_cast %279 : vector<1x16x32xbf16> to vector<16x32xbf16>
    %281 = vector.extract_strided_slice %237 {offsets = [0, 24], sizes = [32, 104], strides = [1, 1]} : vector<32x128xbf16> to vector<32x104xbf16>
    %cst_138 = arith.constant dense<0.000000e+00> : vector<16x104xf32>
    %282 = tpu.matmul %280, %281, %cst_138 {dimension_numbers = #tpu.dot_dimension_numbers<[1], [0], [0], [1], [0, 0, 1, 1], [], []>} : vector<16x32xbf16>, vector<32x104xbf16>, vector<16x104xf32> -> vector<16x104xf32>
    %283 = arith.addf %278, %282 : vector<16x104xf32>
    %284 = arith.negf %283 : vector<16x104xf32>
    %285 = math.exp %284 : vector<16x104xf32>
    %cst_139 = arith.constant 1.000000e+00 : f32
    %286 = vector.broadcast %cst_139 : f32 to vector<16x104xf32>
    %287 = arith.addf %286, %285 : vector<16x104xf32>
    %288 = arith.divf %286, %287 : vector<16x104xf32>
    %289 = arith.mulf %283, %288 : vector<16x104xf32>
    %cst_140 = arith.constant 0.000000e+00 : f32
    %290 = vector.broadcast %cst_140 : f32 to vector<16x128xf32>
    %c0_141 = arith.constant 0 : index
    %c0_142 = arith.constant 0 : index
    %291 = vector.load %arg10[%c0_141, %c0_142] : memref<16x128xf32, #tpu.memory_space<vmem>>, vector<16x128xf32>
    tpu.vector_store %arg10[%c0_141, %c0_142], %290 {strides = array<i32>} : memref<16x128xf32, #tpu.memory_space<vmem>>, vector<16x128xf32>,
    %c0_143 = arith.constant 0 : index
    %c0_144 = arith.constant 0 : index
    %292 = vector.load %arg8[%c0_143, %c0_144] : memref<1x104xf32, #tpu.memory_space<vmem>>, vector<1x104xf32>
    %293 = vector.broadcast %292 : vector<1x104xf32> to vector<16x104xf32>
    %294 = arith.mulf %289, %293 : vector<16x104xf32>
    %c0_145 = arith.constant 0 : index
    %c12_146 = arith.constant 12 : index
    %295 = vector.load %arg10[%c0_145, %c12_146] : memref<16x128xf32, #tpu.memory_space<vmem>>, vector<16x104xf32>
    tpu.vector_store %arg10[%c0_145, %c12_146], %294 {strides = array<i32>} : memref<16x128xf32, #tpu.memory_space<vmem>>, vector<16x104xf32>,
    %c0_147 = arith.constant 0 : index
    %c0_148 = arith.constant 0 : index
    %296 = vector.load %arg10[%c0_147, %c0_148] : memref<16x128xf32, #tpu.memory_space<vmem>>, vector<16x128xf32>
    %297 = arith.truncf %296 : vector<16x128xf32> to vector<16x128xbf16>
    %c0_149 = arith.constant 0 : index
    %c0_150 = arith.constant 0 : index
    %298 = vector.load %arg7[%c0_149, %c0_150] : memref<8x104xf32, #tpu.memory_space<vmem>>, vector<8x104xf32>
    %c0_151 = arith.constant 0 : index
    %c0_152 = arith.constant 0 : index
    %c0_153 = arith.constant 0 : index
    %299 = vector.load %arg6[%c0_151, %c0_152, %c0_153] : memref<9x8x16xbf16, #tpu.memory_space<vmem>>, vector<1x8x16xbf16>
    %300 = vector.shape_cast %299 : vector<1x8x16xbf16> to vector<8x16xbf16>
    %301 = vector.extract_strided_slice %297 {offsets = [0, 0], sizes = [16, 104], strides = [1, 1]} : vector<16x128xbf16> to vector<16x104xbf16>
    %cst_154 = arith.constant dense<0.000000e+00> : vector<8x104xf32>
    %302 = tpu.matmul %300, %301, %cst_154 {dimension_numbers = #tpu.dot_dimension_numbers<[1], [0], [0], [1], [0, 0, 1, 1], [], []>} : vector<8x16xbf16>, vector<16x104xbf16>, vector<8x104xf32> -> vector<8x104xf32>
    %303 = arith.addf %298, %302 : vector<8x104xf32>
    %c1_155 = arith.constant 1 : index
    %c0_156 = arith.constant 0 : index
    %c0_157 = arith.constant 0 : index
    %304 = vector.load %arg6[%c1_155, %c0_156, %c0_157] : memref<9x8x16xbf16, #tpu.memory_space<vmem>>, vector<1x8x16xbf16>
    %305 = vector.shape_cast %304 : vector<1x8x16xbf16> to vector<8x16xbf16>
    %306 = vector.extract_strided_slice %297 {offsets = [0, 1], sizes = [16, 104], strides = [1, 1]} : vector<16x128xbf16> to vector<16x104xbf16>
    %cst_158 = arith.constant dense<0.000000e+00> : vector<8x104xf32>
    %307 = tpu.matmul %305, %306, %cst_158 {dimension_numbers = #tpu.dot_dimension_numbers<[1], [0], [0], [1], [0, 0, 1, 1], [], []>} : vector<8x16xbf16>, vector<16x104xbf16>, vector<8x104xf32> -> vector<8x104xf32>
    %308 = arith.addf %303, %307 : vector<8x104xf32>
    %c2_159 = arith.constant 2 : index
    %c0_160 = arith.constant 0 : index
    %c0_161 = arith.constant 0 : index
    %309 = vector.load %arg6[%c2_159, %c0_160, %c0_161] : memref<9x8x16xbf16, #tpu.memory_space<vmem>>, vector<1x8x16xbf16>
    %310 = vector.shape_cast %309 : vector<1x8x16xbf16> to vector<8x16xbf16>
    %311 = vector.extract_strided_slice %297 {offsets = [0, 2], sizes = [16, 104], strides = [1, 1]} : vector<16x128xbf16> to vector<16x104xbf16>
    %cst_162 = arith.constant dense<0.000000e+00> : vector<8x104xf32>
    %312 = tpu.matmul %310, %311, %cst_162 {dimension_numbers = #tpu.dot_dimension_numbers<[1], [0], [0], [1], [0, 0, 1, 1], [], []>} : vector<8x16xbf16>, vector<16x104xbf16>, vector<8x104xf32> -> vector<8x104xf32>
    %313 = arith.addf %308, %312 : vector<8x104xf32>
    %c3_163 = arith.constant 3 : index
    %c0_164 = arith.constant 0 : index
    %c0_165 = arith.constant 0 : index
    %314 = vector.load %arg6[%c3_163, %c0_164, %c0_165] : memref<9x8x16xbf16, #tpu.memory_space<vmem>>, vector<1x8x16xbf16>
    %315 = vector.shape_cast %314 : vector<1x8x16xbf16> to vector<8x16xbf16>
    %316 = vector.extract_strided_slice %297 {offsets = [0, 11], sizes = [16, 104], strides = [1, 1]} : vector<16x128xbf16> to vector<16x104xbf16>
    %cst_166 = arith.constant dense<0.000000e+00> : vector<8x104xf32>
    %317 = tpu.matmul %315, %316, %cst_166 {dimension_numbers = #tpu.dot_dimension_numbers<[1], [0], [0], [1], [0, 0, 1, 1], [], []>} : vector<8x16xbf16>, vector<16x104xbf16>, vector<8x104xf32> -> vector<8x104xf32>
    %318 = arith.addf %313, %317 : vector<8x104xf32>
    %c4_167 = arith.constant 4 : index
    %c0_168 = arith.constant 0 : index
    %c0_169 = arith.constant 0 : index
    %319 = vector.load %arg6[%c4_167, %c0_168, %c0_169] : memref<9x8x16xbf16, #tpu.memory_space<vmem>>, vector<1x8x16xbf16>
    %320 = vector.shape_cast %319 : vector<1x8x16xbf16> to vector<8x16xbf16>
    %321 = vector.extract_strided_slice %297 {offsets = [0, 12], sizes = [16, 104], strides = [1, 1]} : vector<16x128xbf16> to vector<16x104xbf16>
    %cst_170 = arith.constant dense<0.000000e+00> : vector<8x104xf32>
    %322 = tpu.matmul %320, %321, %cst_170 {dimension_numbers = #tpu.dot_dimension_numbers<[1], [0], [0], [1], [0, 0, 1, 1], [], []>} : vector<8x16xbf16>, vector<16x104xbf16>, vector<8x104xf32> -> vector<8x104xf32>
    %323 = arith.addf %318, %322 : vector<8x104xf32>
    %c5_171 = arith.constant 5 : index
    %c0_172 = arith.constant 0 : index
    %c0_173 = arith.constant 0 : index
    %324 = vector.load %arg6[%c5_171, %c0_172, %c0_173] : memref<9x8x16xbf16, #tpu.memory_space<vmem>>, vector<1x8x16xbf16>
    %325 = vector.shape_cast %324 : vector<1x8x16xbf16> to vector<8x16xbf16>
    %326 = vector.extract_strided_slice %297 {offsets = [0, 13], sizes = [16, 104], strides = [1, 1]} : vector<16x128xbf16> to vector<16x104xbf16>
    %cst_174 = arith.constant dense<0.000000e+00> : vector<8x104xf32>
    %327 = tpu.matmul %325, %326, %cst_174 {dimension_numbers = #tpu.dot_dimension_numbers<[1], [0], [0], [1], [0, 0, 1, 1], [], []>} : vector<8x16xbf16>, vector<16x104xbf16>, vector<8x104xf32> -> vector<8x104xf32>
    %328 = arith.addf %323, %327 : vector<8x104xf32>
    %c6_175 = arith.constant 6 : index
    %c0_176 = arith.constant 0 : index
    %c0_177 = arith.constant 0 : index
    %329 = vector.load %arg6[%c6_175, %c0_176, %c0_177] : memref<9x8x16xbf16, #tpu.memory_space<vmem>>, vector<1x8x16xbf16>
    %330 = vector.shape_cast %329 : vector<1x8x16xbf16> to vector<8x16xbf16>
    %331 = vector.extract_strided_slice %297 {offsets = [0, 22], sizes = [16, 104], strides = [1, 1]} : vector<16x128xbf16> to vector<16x104xbf16>
    %cst_178 = arith.constant dense<0.000000e+00> : vector<8x104xf32>
    %332 = tpu.matmul %330, %331, %cst_178 {dimension_numbers = #tpu.dot_dimension_numbers<[1], [0], [0], [1], [0, 0, 1, 1], [], []>} : vector<8x16xbf16>, vector<16x104xbf16>, vector<8x104xf32> -> vector<8x104xf32>
    %333 = arith.addf %328, %332 : vector<8x104xf32>
    %c7_179 = arith.constant 7 : index
    %c0_180 = arith.constant 0 : index
    %c0_181 = arith.constant 0 : index
    %334 = vector.load %arg6[%c7_179, %c0_180, %c0_181] : memref<9x8x16xbf16, #tpu.memory_space<vmem>>, vector<1x8x16xbf16>
    %335 = vector.shape_cast %334 : vector<1x8x16xbf16> to vector<8x16xbf16>
    %336 = vector.extract_strided_slice %297 {offsets = [0, 23], sizes = [16, 104], strides = [1, 1]} : vector<16x128xbf16> to vector<16x104xbf16>
    %cst_182 = arith.constant dense<0.000000e+00> : vector<8x104xf32>
    %337 = tpu.matmul %335, %336, %cst_182 {dimension_numbers = #tpu.dot_dimension_numbers<[1], [0], [0], [1], [0, 0, 1, 1], [], []>} : vector<8x16xbf16>, vector<16x104xbf16>, vector<8x104xf32> -> vector<8x104xf32>
    %338 = arith.addf %333, %337 : vector<8x104xf32>
    %c8_183 = arith.constant 8 : index
    %c0_184 = arith.constant 0 : index
    %c0_185 = arith.constant 0 : index
    %339 = vector.load %arg6[%c8_183, %c0_184, %c0_185] : memref<9x8x16xbf16, #tpu.memory_space<vmem>>, vector<1x8x16xbf16>
    %340 = vector.shape_cast %339 : vector<1x8x16xbf16> to vector<8x16xbf16>
    %341 = vector.extract_strided_slice %297 {offsets = [0, 24], sizes = [16, 104], strides = [1, 1]} : vector<16x128xbf16> to vector<16x104xbf16>
    %cst_186 = arith.constant dense<0.000000e+00> : vector<8x104xf32>
    %342 = tpu.matmul %340, %341, %cst_186 {dimension_numbers = #tpu.dot_dimension_numbers<[1], [0], [0], [1], [0, 0, 1, 1], [], []>} : vector<8x16xbf16>, vector<16x104xbf16>, vector<8x104xf32> -> vector<8x104xf32>
    %343 = arith.addf %338, %342 : vector<8x104xf32>
    %c0_187 = arith.constant 0 : index
    %c0_188 = arith.constant 0 : index
    %c0_189 = arith.constant 0 : index
    %344 = vector.load %arg9[%c0_187, %c0_188, %c0_189] : memref<1x8x104xf32, #tpu.memory_space<vmem>>, vector<1x8x104xf32>
    %345 = vector.shape_cast %344 : vector<1x8x104xf32> to vector<8x104xf32>
    %346 = vector.shape_cast %343 : vector<8x104xf32> to vector<1x8x104xf32>
    tpu.vector_store %arg9[%c0_187, %c0_188, %c0_189], %346 {strides = array<i32>} : memref<1x8x104xf32, #tpu.memory_space<vmem>>, vector<1x8x104xf32>,
    return
  }
  func.func @transform_0(%arg0: i32) -> (i32, i32) {
    %c0_i32 = arith.constant 0 : i32
    %c0_i32_0 = arith.constant 0 : i32
    %c0_i32_1 = arith.constant 0 : i32
    return %c0_i32, %c0_i32_0 : i32, i32
  }
  func.func @transform_1(%arg0: i32) -> (i32, i32, i32) {
    %c0_i32 = arith.constant 0 : i32
    %c0_i32_0 = arith.constant 0 : i32
    %c0_i32_1 = arith.constant 0 : i32
    %c0_i32_2 = arith.constant 0 : i32
    return %c0_i32, %c0_i32_0, %c0_i32_1 : i32, i32, i32
  }
  func.func @transform_2(%arg0: i32) -> (i32, i32) {
    %c0_i32 = arith.constant 0 : i32
    %c0_i32_0 = arith.constant 0 : i32
    %c0_i32_1 = arith.constant 0 : i32
    return %c0_i32, %c0_i32_0 : i32, i32
  }
  func.func @transform_3(%arg0: i32) -> (i32, i32, i32) {
    %c0_i32 = arith.constant 0 : i32
    %c0_i32_0 = arith.constant 0 : i32
    %c0_i32_1 = arith.constant 0 : i32
    %c0_i32_2 = arith.constant 0 : i32
    return %c0_i32, %c0_i32_0, %c0_i32_1 : i32, i32, i32
  }
  func.func @transform_4(%arg0: i32) -> (i32, i32) {
    %c0_i32 = arith.constant 0 : i32
    %c0_i32_0 = arith.constant 0 : i32
    %c0_i32_1 = arith.constant 0 : i32
    return %c0_i32, %c0_i32_0 : i32, i32
  }
  func.func @transform_5(%arg0: i32) -> (i32, i32, i32) {
    %c0_i32 = arith.constant 0 : i32
    %c0_i32_0 = arith.constant 0 : i32
    %c0_i32_1 = arith.constant 0 : i32
    %c0_i32_2 = arith.constant 0 : i32
    return %c0_i32, %c0_i32_0, %c0_i32_1 : i32, i32, i32
  }
  func.func @transform_6(%arg0: i32) -> (i32, i32) {
    %c0_i32 = arith.constant 0 : i32
    %c0_i32_0 = arith.constant 0 : i32
    %c0_i32_1 = arith.constant 0 : i32
    return %c0_i32, %c0_i32_0 : i32, i32
  }
  func.func @transform_7(%arg0: i32) -> (i32, i32) {
    %c0_i32 = arith.constant 0 : i32
    %c0_i32_0 = arith.constant 0 : i32
    %c0_i32_1 = arith.constant 0 : i32
    return %c0_i32, %c0_i32_0 : i32, i32
  }
  func.func @transform_8(%arg0: i32) -> (i32, i32, i32) {
    %c0_i32 = arith.constant 0 : i32
    %c0_i32_0 = arith.constant 0 : i32
    %c0_i32_1 = arith.constant 0 : i32
    return %arg0, %c0_i32, %c0_i32_0 : i32, i32, i32
  }
}

</mosaic_0001>

<bundles_post_ra>
// kernel: egocentric_decoder_forward.1
= control target key start
LH: loop header
LB: loop body
LE: loop exit
PB: predicated region body
PF: predicated region fallthrough
CT: control target
= control target key end

     0   :  { %13 = vsyncpa [#allocation4], 0  ;;  %s2505_s27 = smov 0   ;;  %s3432_s0 = inlined_call_operand.vmem [shape: f32[2,32], index: 0, kind: input, shape index: {}]   ;;  %s3433_s1 = inlined_call_operand.vmem [shape: f32[32,32,128], index: 1, kind: input, shape index: {}]   ;;  %s3434_s2 = inlined_call_operand.vmem [shape: f32[32,128], index: 2, kind: input, shape index: {}]   ;;  %s3435_s3 = inlined_call_operand.vmem [shape: bf16[9,16,32], index: 3, kind: input, shape index: {}]   ;;  %s3436_s4 = inlined_call_operand.vmem [shape: f32[16,104], index: 4, kind: input, shape index: {}]   ;;  %s3437_s5 = inlined_call_operand.vmem [shape: bf16[9,8,16], index: 5, kind: input, shape index: {}]   ;;  %s3438_s6 = inlined_call_operand.vmem [shape: f32[8,104], index: 6, kind: input, shape index: {}]   ;;  %s3439_s7 = inlined_call_operand.vmem [shape: f32[1,104], index: 7, kind: input, shape index: {}]   ;;  %s3440_s8 = inlined_call_operand.vmem [shape: f32[2,8,104], index: 8, kind: output, shape index: {}]  }
   0x1 LB: > { %s2511_s28 = sadd.s32 4294967295, %s2446_s27   ;;  %p1930_p0 = scmp.ge.s32.totalorder %s2446_s27, 1  ;;  %s2446_s27 = sphi %s2505_s27, %s19_s27  }
   0x2   : > { %p218_p1 = scmp.lt.s32.totalorder %s2446_s27, 3  ;;  %s231_s9 = sshll.u32 %s3432_s0, 4  ;;  %s232_s9 = int_to_ptr.vmem [resolvable:$true] %s231_s9 }
   0x3   : > { %p2366_p3 = scmp.eq.s32.totalorder %s2511_s28, 0  ;;  %s2421_s11 = scalar_lea.vmem %s232_s9, 32 }
   0x4   : > { %p2518_p2 = pnand %p1930_p0, %p218_p1  ;;  %p2422_p6 = scmp.ne.s32.totalorder %s232_s9, %s2421_s11 }
   0x5   : > { %p2429_p10 = scmp.lt.s32.totalorder %s232_s9, %s232_s9  ;;  %p2430_p11 = scmp.lt.s32.totalorder %s2421_s11, %s2421_s11 }
   0x6   : > { %p2362_p4 = pneg %p2518_p2 }
   0x7   : > { %p2431_p12 = por %p2430_p11, %p2429_p10 }
   0x8   : > { %p2363_p5 = pnand %p2366_p3, %p2362_p4 }
   0xa   : > { %p2423_p7 = pneg %p2363_p5 }
   0xc   : > { %p2424_p8 = pnand %p2423_p7, %p2422_p6 }
   0xe   : > { %p2425_p9 = pneg %p2424_p8 }
  0x10   : > { %p2432_p13 = pnand %p2431_p12, %p2425_p9 }
  0x12   : > { %2435 = shalt.err (!%p2432_p13)
}
  0x13   : > { %s2448_s12 = smov [#allocation3]   ;;  %265 = sbr.rel (%p2518_p2) target bundleno = 1138 (0x472), region = 52 }
  0x14   : > { %2365 = dma.vmem_to_smem (!%p2363_p5), %s232_s9, 32, %s2448_s12, [#allocation4]  }
  0x1a   : > { %2441 = dma.done.wait (%p2366_p3), [#allocation4], 32  }
  0x1b   : > { %2443 = vsyncadd (%p2366_p3), [#allocation4], 4294967264 }
  0x1c   : > { %271 = sfence }
  0x1d   : > { %s2534_s13 = sshll.u32 %s2511_s28, 7  ;;  %v305_v0 = vld [vmem:[%s3433_s1] sm:$0xff]  ;;  %v306_v1 = vld [vmem:[%s3433_s1 + $0x8] sm:$0xff]  ;;  %vm2450_vm0 = vmmov 0   ;;  %vm865_vm1 = vcmask 261120   ;;  %vm1427_vm2 = vcmask 949344  }
  0x1e   : > { %s304_s14 = sld [smem:[#allocation3 + %s2534_s13]]  ;;  %s318_s15 = sadd.s32 1, %s2534_s13  ;;  %v299_v2 = vld [vmem:[%s3434_s2] sm:$0xff]  ;;  %v300_v3 = vld [vmem:[%s3434_s2 + $0x8] sm:$0xff]  ;;  %vm1435_vm3 = vcmask 130048   ;;  %vm1873_vm4 = vcmask 850944  }
  0x1f   : > { %s319_s16 = sld [smem:[#allocation3 + %s318_s15]]  ;;  %s334_s17 = sadd.s32 2, %s2534_s13  ;;  %v1936_v7 = vld [vmem:[%s3433_s1 + $0x20] sm:$0xff]  ;;  %v1937_v8 = vld [vmem:[%s3433_s1 + $0x28] sm:$0xff] }
  0x20   : > { %s335_s18 = sld [smem:[#allocation3 + %s334_s17]]  ;;  %s350_s19 = sadd.s32 3, %s2534_s13  ;;  %v1940_v10 = vld [vmem:[%s3433_s1 + $0x40] sm:$0xff]  ;;  %v1941_v11 = vld [vmem:[%s3433_s1 + $0x48] sm:$0xff] }
  0x21   : > { %s2540_s20 = sld [smem:[#allocation3 + %s350_s19]]  ;;  %s366_s21 = sadd.s32 4, %s2534_s13  ;;  %v1948_v13 = vld [vmem:[%s3433_s1 + $0x80] sm:$0xff]  ;;  %v1949_v14 = vld [vmem:[%s3433_s1 + $0x88] sm:$0xff] }
  0x22   : > { %s2549_s26 = sld [smem:[#allocation3 + %s366_s21]]  ;;  %s382_s29 = sadd.s32 5, %s2534_s13  ;;  %v1944_v17 = vld [vmem:[%s3433_s1 + $0x60] sm:$0xff]  ;;  %v1945_v18 = vld [vmem:[%s3433_s1 + $0x68] sm:$0xff] }
  0x23   : > { %s2552_s30 = sld [smem:[#allocation3 + %s382_s29]]  ;;  %s398_s9 = sadd.s32 6, %s2534_s13  ;;  %v1952_v23 = vld [vmem:[%s3433_s1 + $0xa0] sm:$0xff]  ;;  %v1953_v24 = vld [vmem:[%s3433_s1 + $0xa8] sm:$0xff] }
  0x24   : > { %v2561_v4 = vstv %s304_s14  ;;  %s2563_s17 = sld [smem:[#allocation3 + %s398_s9]]  ;;  %s414_s19 = sadd.s32 7, %s2534_s13  ;;  %v1956_v29 = vld [vmem:[%s3433_s1 + $0xc0] sm:$0xff]  ;;  %v1957_v30 = vld [vmem:[%s3433_s1 + $0xc8] sm:$0xff] }
  0x25   : > { %v310_v5 = vmul.f32 %v2561_v4, %v305_v0  ;;  %v311_v6 = vmul.f32 %v2561_v4, %v306_v1  ;;  %v2574_v9 = vstv %s319_s16  ;;  %s2579_s29 = sld [smem:[#allocation3 + %s414_s19]]  ;;  %s430_s9 = sadd.s32 8, %s2534_s13  ;;  %v1960_v35 = vld [vmem:[%s3433_s1 + $0xe0] sm:$0xff]  ;;  %v1961_v36 = vld [vmem:[%s3433_s1 + $0xe8] sm:$0xff] }
  0x26   : > { %v2585_v12 = vstv %s335_s18  ;;  %s2593_s19 = sld [smem:[#allocation3 + %s430_s9]]  ;;  %s446_s22 = sadd.s32 9, %s2534_s13  ;;  %v326_v19 = vmul.f32 %v1936_v7, %v2574_v9  ;;  %v327_v20 = vmul.f32 %v1937_v8, %v2574_v9  ;;  %v1964_v41 = vld [vmem:[%s3433_s1 + $0x100] sm:$0xff]  ;;  %v1965_v42 = vld [vmem:[%s3433_s1 + $0x108] sm:$0xff] }
  0x27   : > { %v314_v15 = vadd.f32 %v310_v5, %v299_v2  ;;  %v315_v16 = vadd.f32 %v311_v6, %v300_v3  ;;  %s2602_s25 = sld [smem:[#allocation3 + %s446_s22]]  ;;  %s462_s10 = sadd.s32 10, %s2534_s13  ;;  %v2608_v21 = vstv %s2540_s20  ;;  %v342_v25 = vmul.f32 %v1940_v10, %v2585_v12  ;;  %v1968_v51 = vld [vmem:[%s3433_s1 + $0x120] sm:$0xff]  ;;  %v1969_v52 = vld [vmem:[%s3433_s1 + $0x128] sm:$0xff] }
  0x28   : > { %v2611_v22 = vstv %s2549_s26  ;;  %s2619_s16 = sld [smem:[#allocation3 + %s462_s10]]  ;;  %s478_s21 = sadd.s32 11, %s2534_s13  ;;  %v343_v26 = vmul.f32 %v1941_v11, %v2585_v12  ;;  %v358_v31 = vmul.f32 %v1944_v17, %v2608_v21  ;;  %v359_v32 = vmul.f32 %v1945_v18, %v2608_v21  ;;  %v1972_v57 = vld [vmem:[%s3433_s1 + $0x140] sm:$0xff]  ;;  %v1973_v58 = vld [vmem:[%s3433_s1 + $0x148] sm:$0xff] }
  0x29   : > { %v374_v27 = vmul.f32 %v1948_v13, %v2611_v22  ;;  %v375_v28 = vmul.f32 %v1949_v14, %v2611_v22  ;;  %s2632_s24 = sld [smem:[#allocation3 + %s478_s21]]  ;;  %s494_s18 = sadd.s32 12, %s2534_s13  ;;  %v2638_v33 = vstv %s2552_s30  ;;  %v1976_v63 = vld [vmem:[%s3433_s1 + $0x160] sm:$0xff]  ;;  %v1977_v0 = vld [vmem:[%s3433_s1 + $0x168] sm:$0xff] }
  0x2a   : > { %v2641_v34 = vstv %s2563_s17  ;;  %s2649_s12 = sld [smem:[#allocation3 + %s494_s18]]  ;;  %s510_s15 = sadd.s32 13, %s2534_s13  ;;  %v390_v39 = vmul.f32 %v1952_v23, %v2638_v33  ;;  %v391_v40 = vmul.f32 %v1953_v24, %v2638_v33  ;;  %v1980_v6 = vld [vmem:[%s3433_s1 + $0x180] sm:$0xff]  ;;  %v1981_v7 = vld [vmem:[%s3433_s1 + $0x188] sm:$0xff] }
  0x2b   : > { %v378_v37 = vadd.f32 %v374_v27, %v314_v15  ;;  %v379_v38 = vadd.f32 %v375_v28, %v315_v16  ;;  %s2660_s26 = sld [smem:[#allocation3 + %s510_s15]]  ;;  %s526_s22 = sadd.s32 14, %s2534_s13  ;;  %v406_v43 = vmul.f32 %v1956_v29, %v2641_v34  ;;  %v407_v44 = vmul.f32 %v1957_v30, %v2641_v34  ;;  %v1984_v18 = vld [vmem:[%s3433_s1 + $0x1a0] sm:$0xff]  ;;  %v1989_v27 = vld [vmem:[%s3433_s1 + $0x1c8] sm:$0xff] }
  0x2c   : > { %v2666_v45 = vstv %s2579_s29  ;;  %v2669_v46 = vstv %s2593_s19  ;;  %s2671_s23 = sld [smem:[#allocation3 + %s526_s22]]  ;;  %s542_s18 = sadd.s32 15, %s2534_s13  ;;  %v394_v47 = vadd.f32 %v390_v39, %v326_v19  ;;  %v395_v48 = vadd.f32 %v391_v40, %v327_v20  ;;  %v1985_v19 = vld [vmem:[%s3433_s1 + $0x1a8] sm:$0xff]  ;;  %v1996_v40 = vld [vmem:[%s3433_s1 + $0x200] sm:$0xff] }
  0x2d   : > { %v422_v49 = vmul.f32 %v1960_v35, %v2666_v45  ;;  %v423_v50 = vmul.f32 %v1961_v36, %v2666_v45  ;;  %s2682_s19 = sld [smem:[#allocation3 + %s542_s18]]  ;;  %s558_s11 = sadd.s32 16, %s2534_s13  ;;  %v410_v53 = vadd.f32 %v406_v43, %v342_v25  ;;  %v411_v54 = vadd.f32 %v407_v44, %v343_v26  ;;  %v1988_v26 = vld [vmem:[%s3433_s1 + $0x1c0] sm:$0xff]  ;;  %v1993_v35 = vld [vmem:[%s3433_s1 + $0x1e8] sm:$0xff] }
  0x2e   : > { %v438_v55 = vmul.f32 %v1964_v41, %v2669_v46  ;;  %v439_v56 = vmul.f32 %v1965_v42, %v2669_v46  ;;  %s2693_s20 = sld [smem:[#allocation3 + %s558_s11]]  ;;  %s574_s22 = sadd.s32 17, %s2534_s13  ;;  %v2697_v61 = vstv %s2602_s25  ;;  %v2700_v62 = vstv %s2619_s16  ;;  %v1997_v41 = vld [vmem:[%s3433_s1 + $0x208] sm:$0xff] }
  0x2f   : > { %v426_v59 = vadd.f32 %v422_v49, %v358_v31  ;;  %v427_v60 = vadd.f32 %v423_v50, %v359_v32  ;;  %s590_s9 = sadd.s32 18, %s2534_s13  ;;  %v454_v3 = vmul.f32 %v1968_v51, %v2697_v61  ;;  %v455_v5 = vmul.f32 %v1969_v52, %v2697_v61  ;;  %s2717_s30 = sld [smem:[#allocation3 + %s574_s22]]  ;;  %v1992_v32 = vld [vmem:[%s3433_s1 + $0x1e0] sm:$0xff] }
  0x30   : > { %v442_v1 = vadd.f32 %v438_v55, %v378_v37  ;;  %v443_v2 = vadd.f32 %v439_v56, %v379_v38  ;;  %s606_s17 = sadd.s32 19, %s2534_s13  ;;  %v470_v8 = vmul.f32 %v1972_v57, %v2700_v62  ;;  %v471_v10 = vmul.f32 %v1973_v58, %v2700_v62  ;;  %s2728_s21 = sld [smem:[#allocation3 + %s590_s9]]  ;;  %v2000_v52 = vld [vmem:[%s3433_s1 + $0x220] sm:$0xff] }
  0x31   : > { %v2723_v11 = vstv %s2632_s24  ;;  %v2726_v13 = vstv %s2649_s12  ;;  %s622_s18 = sadd.s32 20, %s2534_s13  ;;  %v458_v14 = vadd.f32 %v454_v3, %v394_v47  ;;  %v459_v15 = vadd.f32 %v455_v5, %v395_v48  ;;  %s2739_s10 = sld [smem:[#allocation3 + %s606_s17]]  ;;  %v2004_v58 = vld [vmem:[%s3433_s1 + $0x240] sm:$0xff]  ;;  %v2009_v3 = vld [vmem:[%s3433_s1 + $0x268] sm:$0xff] }
  0x32   : > { %v486_v16 = vmul.f32 %v1976_v63, %v2723_v11  ;;  %v487_v17 = vmul.f32 %v1977_v0, %v2723_v11  ;;  %s2741_s29 = sld [smem:[#allocation3 + %s622_s18]]  ;;  %v474_v20 = vadd.f32 %v470_v8, %v410_v53  ;;  %v475_v23 = vadd.f32 %v471_v10, %v411_v54  ;;  %s638_s15 = sadd.s32 21, %s2534_s13  ;;  %v2001_v53 = vld [vmem:[%s3433_s1 + $0x228] sm:$0xff]  ;;  %v2012_v10 = vld [vmem:[%s3433_s1 + $0x280] sm:$0xff] }
  0x33   : > { %v502_v24 = vmul.f32 %v1980_v6, %v2726_v13  ;;  %v503_v25 = vmul.f32 %v1981_v7, %v2726_v13  ;;  %s654_s17 = sadd.s32 22, %s2534_s13  ;;  %v2754_v30 = vstv %s2660_s26  ;;  %v2757_v31 = vstv %s2671_s23  ;;  %s670_s12 = sadd.s32 23, %s2534_s13 }
  0x34   : > { %v490_v28 = vadd.f32 %v486_v16, %v426_v59  ;;  %v491_v29 = vadd.f32 %v487_v17, %v427_v60  ;;  %v518_v38 = vmul.f32 %v1984_v18, %v2754_v30  ;;  %v519_v39 = vmul.f32 %v1985_v19, %v2754_v30  ;;  %s686_s11 = sadd.s32 24, %s2534_s13  ;;  %s2783_s16 = sld [smem:[#allocation3 + %s638_s15]]  ;;  %v2005_v59 = vld [vmem:[%s3433_s1 + $0x248] sm:$0xff] }
  0x35   : > { %v506_v36 = vadd.f32 %v502_v24, %v442_v1  ;;  %v507_v37 = vadd.f32 %v503_v25, %v443_v2  ;;  %v534_v42 = vmul.f32 %v1988_v26, %v2757_v31  ;;  %v535_v43 = vmul.f32 %v1989_v27, %v2757_v31  ;;  %s2785_s18 = sld [smem:[#allocation3 + %s654_s17]]  ;;  %s718_s25 = sadd.s32 26, %s2534_s13  ;;  %v2008_v2 = vld [vmem:[%s3433_s1 + $0x260] sm:$0xff]  ;;  %v2017_v26 = vld [vmem:[%s3433_s1 + $0x2a8] sm:$0xff] }
  0x36   : > { %v2778_v44 = vstv %s2682_s19  ;;  %v2781_v47 = vstv %s2693_s20  ;;  %v522_v48 = vadd.f32 %v518_v38, %v458_v14  ;;  %v523_v49 = vadd.f32 %v519_v39, %v459_v15  ;;  %s2795_s15 = sld [smem:[#allocation3 + %s670_s12]]  ;;  %s702_s12 = sadd.s32 25, %s2534_s13  ;;  %v2013_v14 = vld [vmem:[%s3433_s1 + $0x288] sm:$0xff]  ;;  %v2016_v25 = vld [vmem:[%s3433_s1 + $0x2a0] sm:$0xff] }
  0x37   : > { %v550_v50 = vmul.f32 %v1992_v32, %v2778_v44  ;;  %v551_v51 = vmul.f32 %v1993_v35, %v2778_v44  ;;  %s2797_s17 = sld [smem:[#allocation3 + %s686_s11]]  ;;  %v538_v54 = vadd.f32 %v534_v42, %v474_v20  ;;  %v539_v55 = vadd.f32 %v535_v43, %v475_v23  ;;  %s734_s20 = sadd.s32 27, %s2534_s13  ;;  %v2020_v35 = vld [vmem:[%s3433_s1 + $0x2c0] sm:$0xff]  ;;  %v2025_v42 = vld [vmem:[%s3433_s1 + $0x2e8] sm:$0xff] }
  0x38   : > { %v566_v56 = vmul.f32 %v1996_v40, %v2781_v47  ;;  %v567_v57 = vmul.f32 %v1997_v41, %v2781_v47  ;;  %v2810_v0 = vstv %s2717_s30  ;;  %v2813_v1 = vstv %s2728_s21  ;;  %s750_s24 = sadd.s32 28, %s2534_s13  ;;  %s2839_s23 = sld [smem:[#allocation3 + %s702_s12]]  ;;  %v2024_v41 = vld [vmem:[%s3433_s1 + $0x2e0] sm:$0xff] }
  0x39   : > { %v554_v60 = vadd.f32 %v550_v50, %v490_v28  ;;  %v555_v63 = vadd.f32 %v551_v51, %v491_v29  ;;  %v582_v7 = vmul.f32 %v2000_v52, %v2810_v0  ;;  %v583_v8 = vmul.f32 %v2001_v53, %v2810_v0  ;;  %s2841_s11 = sld [smem:[#allocation3 + %s718_s25]]  ;;  %s766_s26 = sadd.s32 29, %s2534_s13  ;;  %v2028_v51 = vld [vmem:[%s3433_s1 + $0x300] sm:$0xff]  ;;  %v2029_v52 = vld [vmem:[%s3433_s1 + $0x308] sm:$0xff] }
  0x3a   : > { %v570_v5 = vadd.f32 %v566_v56, %v506_v36  ;;  %v571_v6 = vadd.f32 %v567_v57, %v507_v37  ;;  %v598_v15 = vmul.f32 %v2004_v58, %v2813_v1  ;;  %v599_v16 = vmul.f32 %v2005_v59, %v2813_v1  ;;  %s2851_s12 = sld [smem:[#allocation3 + %s734_s20]]  ;;  %v2021_v36 = vld [vmem:[%s3433_s1 + $0x2c8] sm:$0xff]  ;;  %s782_s20 = sadd.s32 30, %s2534_s13 }
  0x3b   : > { %v2834_v17 = vstv %s2739_s10  ;;  %v2837_v18 = vstv %s2741_s29  ;;  %v586_v19 = vadd.f32 %v582_v7, %v522_v48  ;;  %v587_v20 = vadd.f32 %v583_v8, %v523_v49  ;;  %s2853_s25 = sld [smem:[#allocation3 + %s750_s24]]  ;;  %s798_s30 = sadd.s32 31, %s2534_s13  ;;  %v2036_v8 = vld [vmem:[%s3433_s1 + $0x340] sm:$0xff] }
  0x3c   : > { %v614_v23 = vmul.f32 %v2008_v2, %v2834_v17  ;;  %v615_v24 = vmul.f32 %v2009_v3, %v2834_v17  ;;  %v602_v27 = vadd.f32 %v598_v15, %v538_v54  ;;  %v603_v28 = vadd.f32 %v599_v16, %v539_v55  ;;  %s2894_s9 = sld [smem:[#allocation3 + %s766_s26]]  ;;  %v2033_v2 = vld [vmem:[%s3433_s1 + $0x328] sm:$0xff]  ;;  %s2452_s26 = smov 126  }
  0x3d   : > { %v630_v29 = vmul.f32 %v2012_v10, %v2837_v18  ;;  %v631_v32 = vmul.f32 %v2013_v14, %v2837_v18  ;;  %v2866_v39 = vstv %s2783_s16  ;;  %v2869_v40 = vstv %s2785_s18  ;;  %s2896_s21 = sld [smem:[#allocation3 + %s782_s20]]  ;;  %v2037_v10 = vld [vmem:[%s3433_s1 + $0x348] sm:$0xff]  ;;  %s2453_s14 = smov 117  }
  0x3e   : > { %v618_v37 = vadd.f32 %v614_v23, %v554_v60  ;;  %v619_v38 = vadd.f32 %v615_v24, %v555_v63  ;;  %v646_v49 = vmul.f32 %v2016_v25, %v2866_v39  ;;  %v647_v50 = vmul.f32 %v2017_v26, %v2866_v39  ;;  %v2032_v63 = vld [vmem:[%s3433_s1 + $0x320] sm:$0xff]  ;;  %s2914_s10 = sld [smem:[#allocation3 + %s798_s30]]  ;;  %v2041_v23 = vld [vmem:[%s3433_s1 + $0x368] sm:$0xff]  ;;  %s2454_s29 = smov 116  }
  0x3f   : > { %v634_v43 = vadd.f32 %v630_v29, %v570_v5  ;;  %v635_v48 = vadd.f32 %v631_v32, %v571_v6  ;;  %v662_v53 = vmul.f32 %v2020_v35, %v2869_v40  ;;  %v663_v54 = vmul.f32 %v2021_v36, %v2869_v40  ;;  %v2045_v29 = vld [vmem:[%s3433_s1 + $0x388] sm:$0xff]  ;;  %s2455_s19 = smov 115   ;;  %s2456_s16 = smov 106  }
  0x40   : > { %v2889_v55 = vstv %s2795_s15  ;;  %v2892_v56 = vstv %s2797_s17  ;;  %v650_v57 = vadd.f32 %v646_v49, %v586_v19  ;;  %v651_v58 = vadd.f32 %v647_v50, %v587_v20  ;;  %v2040_v20 = vld [vmem:[%s3433_s1 + $0x360] sm:$0xff]  ;;  %v2049_v49 = vld [vmem:[%s3433_s1 + $0x3a8] sm:$0xff]  ;;  %s2457_s18 = smov 105   ;;  %s2458_s30 = smov 104  }
  0x41   : > { %v678_v59 = vmul.f32 %v2024_v41, %v2889_v55  ;;  %v679_v60 = vmul.f32 %v2025_v42, %v2889_v55  ;;  %v666_v3 = vadd.f32 %v662_v53, %v602_v27  ;;  %v667_v5 = vadd.f32 %v663_v54, %v603_v28  ;;  %v2044_v28 = vld [vmem:[%s3433_s1 + $0x380] sm:$0xff]  ;;  %p294_p0 = scmp.lt.s32.totalorder %s2511_s28, 1 }
  0x42   : > { %v694_v6 = vmul.f32 %v2028_v51, %v2892_v56  ;;  %v695_v7 = vmul.f32 %v2029_v52, %v2892_v56  ;;  %v2917_v16 = vstv %s2839_s23  ;;  %v2920_v19 = vstv %s2841_s11  ;;  %v2052_v54 = vld [vmem:[%s3433_s1 + $0x3c0] sm:$0xff] }
  0x43   : > { %v682_v14 = vadd.f32 %v678_v59, %v618_v37  ;;  %v683_v15 = vadd.f32 %v679_v60, %v619_v38  ;;  %v710_v26 = vmul.f32 %v2032_v63, %v2917_v16  ;;  %v711_v27 = vmul.f32 %v2033_v2, %v2917_v16  ;;  %s3443_s28 = smov (!%p294_p0, %s2511_s28), 1 }
  0x44   : > { %v698_v24 = vadd.f32 %v694_v6, %v634_v43  ;;  %v699_v25 = vadd.f32 %v695_v7, %v635_v48  ;;  %v726_v32 = vmul.f32 %v2036_v8, %v2920_v19  ;;  %v727_v35 = vmul.f32 %v2037_v10, %v2920_v19  ;;  %v2048_v48 = vld [vmem:[%s3433_s1 + $0x3a0] sm:$0xff] }
  0x45   : > { %v2939_v36 = vstv %s2851_s12  ;;  %v2942_v37 = vstv %s2853_s25  ;;  %v714_v38 = vadd.f32 %v710_v26, %v650_v57  ;;  %v715_v41 = vadd.f32 %v711_v27, %v651_v58  ;;  %v2053_v57 = vld [vmem:[%s3433_s1 + $0x3c8] sm:$0xff]  ;;  %v307_v58 = vld [vmem:[%s3433_s1 + $0x10] sm:$0xff]  ;;  %s2451_s25 = smov 127   ;;  %s1934_s12 = sshll.u32 %s3443_s28, 3 }
  0x46   : > { %v742_v42 = vmul.f32 %v2040_v20, %v2939_v36  ;;  %v743_v43 = vmul.f32 %v2041_v23, %v2939_v36  ;;  %v730_v50 = vadd.f32 %v726_v32, %v666_v3  ;;  %v731_v51 = vadd.f32 %v727_v35, %v667_v5  ;;  %v2056_v3 = vld [vmem:[%s3433_s1 + $0x3e0] sm:$0xff]  ;;  %v2057_v5 = vld [vmem:[%s3433_s1 + $0x3e8] sm:$0xff]  ;;  %v308_v20 = vld [vmem:[%s3433_s1 + $0x18] sm:$0xff] }
  0x47   : > { %v758_v52 = vmul.f32 %v2044_v28, %v2942_v37  ;;  %v759_v53 = vmul.f32 %v2045_v29, %v2942_v37  ;;  %v2964_v63 = vstv %s2894_s9  ;;  %v2967_v2 = vstv %s2896_s21  ;;  %v1938_v27 = vld [vmem:[%s3433_s1 + $0x30] sm:$0xff]  ;;  %v1939_v28 = vld [vmem:[%s3433_s1 + $0x38] sm:$0xff] }
  0x48   : > { %v746_v59 = vadd.f32 %v742_v42, %v682_v14  ;;  %v747_v60 = vadd.f32 %v743_v43, %v683_v15  ;;  %v774_v8 = vmul.f32 %v2048_v48, %v2964_v63  ;;  %v775_v10 = vmul.f32 %v2049_v49, %v2964_v63  ;;  %v301_v14 = vld [vmem:[%s3434_s2 + $0x10] sm:$0xff]  ;;  %v302_v15 = vld [vmem:[%s3434_s2 + $0x18] sm:$0xff] }
  0x49   : > { %v762_v6 = vadd.f32 %v758_v52, %v698_v24  ;;  %v763_v7 = vadd.f32 %v759_v53, %v699_v25  ;;  %v790_v23 = vmul.f32 %v2052_v54, %v2967_v2  ;;  %v791_v24 = vmul.f32 %v2053_v57, %v2967_v2  ;;  %v1942_v29 = vld [vmem:[%s3433_s1 + $0x50] sm:$0xff]  ;;  %v1943_v48 = vld [vmem:[%s3433_s1 + $0x58] sm:$0xff] }
  0x4a   : > { %v2989_v25 = vstv %s2914_s10  ;;  %v312_v26 = vmul.f32 %v2561_v4, %v307_v58  ;;  %v778_v32 = vadd.f32 %v774_v8, %v714_v38  ;;  %v779_v35 = vadd.f32 %v775_v10, %v715_v41  ;;  %v1946_v49 = vld [vmem:[%s3433_s1 + $0x70] sm:$0xff]  ;;  %v1947_v52 = vld [vmem:[%s3433_s1 + $0x78] sm:$0xff]  ;;  %s2459_s10 = smov 12  }
  0x4b   : > { %v806_v42 = vmul.f32 %v2056_v3, %v2989_v25  ;;  %v807_v43 = vmul.f32 %v2057_v5, %v2989_v25  ;;  %v794_v53 = vadd.f32 %v790_v23, %v730_v50  ;;  %v795_v54 = vadd.f32 %v791_v24, %v731_v51  ;;  %v1950_v57 = vld [vmem:[%s3433_s1 + $0x90] sm:$0xff]  ;;  %v1951_v58 = vld [vmem:[%s3433_s1 + $0x98] sm:$0xff] }
  0x4c   : > { %v313_v38 = vmul.f32 %v2561_v4, %v308_v20  ;;  %v316_v41 = vadd.f32 %v312_v26, %v301_v14  ;;  %v1954_v3 = vld [vmem:[%s3433_s1 + $0xb0] sm:$0xff]  ;;  %v814_v10 = vadd.f32 %v778_v32, %v762_v6  ;;  %v815_v50 = vadd.f32 %v779_v35, %v763_v7  ;;  %v1955_v4 = vld [vmem:[%s3433_s1 + $0xb8] sm:$0xff] }
  0x4d   : > { %v810_v5 = vadd.f32 %v806_v42, %v746_v59  ;;  %v811_v8 = vadd.f32 %v807_v43, %v747_v60  ;;  %v1958_v51 = vld [vmem:[%s3433_s1 + $0xd0] sm:$0xff]  ;;  %v328_v20 = vmul.f32 %v1938_v27, %v2574_v9  ;;  %v329_v23 = vmul.f32 %v1939_v28, %v2574_v9  ;;  %v1959_v59 = vld [vmem:[%s3433_s1 + $0xd8] sm:$0xff] }
  0x4e   : > { %v317_v14 = vadd.f32 %v313_v38, %v302_v15  ;;  %v344_v24 = vmul.f32 %v1942_v29, %v2585_v12  ;;  %v818_v60 = vadd.f32 %v814_v10, %v794_v53  ;;  %v819_v6 = vadd.f32 %v815_v50, %v795_v54  ;;  %v1962_v15 = vld [vmem:[%s3433_s1 + $0xf0] sm:$0xff]  ;;  %v1963_v9 = vld [vmem:[%s3433_s1 + $0xf8] sm:$0xff] }
  0x4f   : > { %v345_v7 = vmul.f32 %v1943_v48, %v2585_v12  ;;  %v360_v26 = vmul.f32 %v1946_v49, %v2608_v21  ;;  %v1966_v27 = vld [vmem:[%s3433_s1 + $0x110] sm:$0xff]  ;;  %v361_v28 = vmul.f32 %v1947_v52, %v2608_v21  ;;  %v376_v29 = vmul.f32 %v1950_v57, %v2611_v22  ;;  %v1967_v35 = vld [vmem:[%s3433_s1 + $0x118] sm:$0xff] }
  0x50   : > { %v377_v12 = vmul.f32 %v1951_v58, %v2611_v22  ;;  %v392_v32 = vmul.f32 %v1954_v3, %v2638_v33  ;;  %v1970_v42 = vld [vmem:[%s3433_s1 + $0x130] sm:$0xff]  ;;  %v1971_v43 = vld [vmem:[%s3433_s1 + $0x138] sm:$0xff]  ;;  %v3058_v48 = vadd.f32 %v818_v60, %v810_v5  ;;  %v3060_v21 = vadd.f32 %v819_v6, %v811_v8 }
  0x51   : > { %v393_v22 = vmul.f32 %v1955_v4, %v2638_v33  ;;  %v408_v49 = vmul.f32 %v1958_v51, %v2641_v34  ;;  %v380_v52 = vadd.f32 %v376_v29, %v316_v41  ;;  %v409_v38 = vmul.f32 %v1959_v59, %v2641_v34  ;;  %v1974_v57 = vld [vmem:[%s3433_s1 + $0x150] sm:$0xff]  ;;  %v1975_v34 = vld [vmem:[%s3433_s1 + $0x158] sm:$0xff] }
  0x52   : > { %v381_v53 = vadd.f32 %v377_v12, %v317_v14  ;;  %v396_v54 = vadd.f32 %v392_v32, %v328_v20  ;;  %v2060_v58 = vmul.f32 -1.442695, %v3058_v48  ;;  %v2061_v3 = vmul.f32 -1.442695, %v3060_v21  ;;  %v1978_v20 = vld [vmem:[%s3433_s1 + $0x170] sm:$0xff]  ;;  %v1987_v6 = vld [vmem:[%s3433_s1 + $0x1b8] sm:$0xff] }
  0x53   : > { %v397_v5 = vadd.f32 %v393_v22, %v329_v23  ;;  %v412_v8 = vadd.f32 %v408_v49, %v344_v24  ;;  %v413_v10 = vadd.f32 %v409_v38, %v345_v7  ;;  %v424_v33 = vmul.f32 %v1962_v15, %v2666_v45  ;;  %v1982_v23 = vld [vmem:[%s3433_s1 + $0x190] sm:$0xff]  ;;  %v1995_v49 = vld [vmem:[%s3433_s1 + $0x1f8] sm:$0xff] }
  0x54   : > { %v425_v50 = vmul.f32 %v1963_v9, %v2666_v45  ;;  %v440_v41 = vmul.f32 %v1966_v27, %v2669_v46  ;;  %2397 = vpow2.f32 %v2060_v58  ;;  %v441_v4 = vmul.f32 %v1967_v35, %v2669_v46  ;;  %v1979_v45 = vld [vmem:[%s3433_s1 + $0x178] sm:$0xff]  ;;  %v1986_v60 = vld [vmem:[%s3433_s1 + $0x1b0] sm:$0xff] }
  0x55   : > { %v456_v51 = vmul.f32 %v1970_v42, %v2697_v61  ;;  %v457_v14 = vmul.f32 %v1971_v43, %v2697_v61  ;;  %2399 = vpow2.f32 %v2061_v3  ;;  %v428_v24 = vadd.f32 %v424_v33, %v360_v26  ;;  %v1983_v61 = vld [vmem:[%s3433_s1 + $0x198] sm:$0xff]  ;;  %v1990_v32 = vld [vmem:[%s3433_s1 + $0x1d0] sm:$0xff] }
  0x56   : > { %v429_v59 = vadd.f32 %v425_v50, %v361_v28  ;;  %v444_v46 = vadd.f32 %v440_v41, %v380_v52  ;;  %v445_v7 = vadd.f32 %v441_v4, %v381_v53  ;;  %v472_v27 = vmul.f32 %v1974_v57, %v2700_v62  ;;  %v1991_v35 = vld [vmem:[%s3433_s1 + $0x1d8] sm:$0xff]  ;;  %v1998_v52 = vld [vmem:[%s3433_s1 + $0x210] sm:$0xff] }
  0x57   : > { %v460_v15 = vadd.f32 %v456_v51, %v396_v54  ;;  %v461_v9 = vadd.f32 %v457_v14, %v397_v5  ;;  %v473_v26 = vmul.f32 %v1975_v34, %v2700_v62  ;;  %v488_v28 = vmul.f32 %v1978_v20, %v2723_v11  ;;  %v2002_v57 = vld [vmem:[%s3433_s1 + $0x230] sm:$0xff]  ;;  %v2003_v58 = vld [vmem:[%s3433_s1 + $0x238] sm:$0xff] }
  0x58   : > { %v489_v29 = vmul.f32 %v1979_v45, %v2723_v11  ;;  %v504_v12 = vmul.f32 %v1982_v23, %v2726_v13  ;;  %v476_v42 = vadd.f32 %v472_v27, %v412_v8  ;;  %v505_v43 = vmul.f32 %v1983_v61, %v2726_v13  ;;  %v1994_v11 = vld [vmem:[%s3433_s1 + $0x1f0] sm:$0xff]  ;;  %v2011_v23 = vld [vmem:[%s3433_s1 + $0x278] sm:$0xff] }
  0x59   : > { %v520_v22 = vmul.f32 %v1986_v60, %v2754_v30  ;;  %v521_v62 = vmul.f32 %v1987_v6, %v2754_v30  ;;  %v477_v53 = vadd.f32 %v473_v26, %v413_v10  ;;  %v492_v54 = vadd.f32 %v488_v28, %v428_v24  ;;  %v1999_v30 = vld [vmem:[%s3433_s1 + $0x218] sm:$0xff]  ;;  %v2006_v4 = vld [vmem:[%s3433_s1 + $0x250] sm:$0xff] }
  0x5a   : > { %v493_v38 = vadd.f32 %v489_v29, %v429_v59  ;;  %v508_v13 = vadd.f32 %v504_v12, %v444_v46  ;;  %v509_v3 = vadd.f32 %v505_v43, %v445_v7  ;;  %v536_v10 = vmul.f32 %v1990_v32, %v2757_v31  ;;  %v2015_v61 = vld [vmem:[%s3433_s1 + $0x298] sm:$0xff]  ;;  %v2018_v32 = vld [vmem:[%s3433_s1 + $0x2b0] sm:$0xff] }
  0x5b   : > { %v524_v5 = vadd.f32 %v520_v22, %v460_v15  ;;  %v525_v8 = vadd.f32 %v521_v62, %v461_v9  ;;  %v537_v33 = vmul.f32 %v1991_v35, %v2757_v31  ;;  %v552_v50 = vmul.f32 %v1994_v11, %v2778_v44  ;;  %v2007_v31 = vld [vmem:[%s3433_s1 + $0x258] sm:$0xff]  ;;  %v2026_v11 = vld [vmem:[%s3433_s1 + $0x2f0] sm:$0xff] }
  0x5c   : > { %v553_v41 = vmul.f32 %v1995_v49, %v2778_v44  ;;  %v568_v34 = vmul.f32 %v1998_v52, %v2781_v47  ;;  %v540_v51 = vadd.f32 %v536_v10, %v476_v42  ;;  %v569_v14 = vmul.f32 %v1999_v30, %v2781_v47  ;;  %v2010_v44 = vld [vmem:[%s3433_s1 + $0x270] sm:$0xff]  ;;  %v2019_v35 = vld [vmem:[%s3433_s1 + $0x2b8] sm:$0xff] }
  0x5d   : > { %v584_v20 = vmul.f32 %v2002_v57, %v2810_v0  ;;  %v585_v45 = vmul.f32 %v2003_v58, %v2810_v0  ;;  %v541_v24 = vadd.f32 %v537_v33, %v477_v53  ;;  %v556_v59 = vadd.f32 %v552_v50, %v492_v54  ;;  %v2014_v0 = vld [vmem:[%s3433_s1 + $0x290] sm:$0xff]  ;;  %v2035_v33 = vld [vmem:[%s3433_s1 + $0x338] sm:$0xff] }
  0x5e   : > { %v557_v46 = vadd.f32 %v553_v41, %v493_v38  ;;  %v572_v47 = vadd.f32 %v568_v34, %v508_v13  ;;  %v2398_v60 = vpop.eup %2397  ;;  %v573_v6 = vadd.f32 %v569_v14, %v509_v3  ;;  %v600_v9 = vmul.f32 %v2006_v4, %v2813_v1  ;;  %v2030_v54 = vld [vmem:[%s3433_s1 + $0x310] sm:$0xff]  ;;  %v2031_v38 = vld [vmem:[%s3433_s1 + $0x318] sm:$0xff] }
  0x5f   : > { %v588_v7 = vadd.f32 %v584_v20, %v524_v5  ;;  %v589_v15 = vadd.f32 %v585_v45, %v525_v8  ;;  %v2400_v27 = vpop.eup %2399  ;;  %v838_v26 = vadd.f32 1.0, %v2398_v60  ;;  %v601_v28 = vmul.f32 %v2007_v31, %v2813_v1  ;;  %v2022_v1 = vld [vmem:[%s3433_s1 + $0x2d0] sm:$0xff]  ;;  %v2039_v4 = vld [vmem:[%s3433_s1 + $0x358] sm:$0xff] }
  0x60   : > { %v616_v29 = vmul.f32 %v2010_v44, %v2834_v17  ;;  %v617_v12 = vmul.f32 %v2011_v23, %v2834_v17  ;;  %v839_v42 = vadd.f32 1.0, %v2400_v27  ;;  %v604_v43 = vadd.f32 %v600_v9, %v540_v51  ;;  %v2023_v17 = vld [vmem:[%s3433_s1 + $0x2d8] sm:$0xff]  ;;  %v2034_v10 = vld [vmem:[%s3433_s1 + $0x330] sm:$0xff] }
  0x61   : > { %v632_v22 = vmul.f32 %v2014_v0, %v2837_v18  ;;  %v633_v62 = vmul.f32 %v2015_v61, %v2837_v18  ;;  %2401 = vrcp.f32 %v838_v26  ;;  %v605_v49 = vadd.f32 %v601_v28, %v541_v24  ;;  %v2027_v18 = vld [vmem:[%s3433_s1 + $0x2f8] sm:$0xff]  ;;  %v2042_v51 = vld [vmem:[%s3433_s1 + $0x370] sm:$0xff] }
  0x62   : > { %v620_v52 = vadd.f32 %v616_v29, %v556_v59  ;;  %v621_v53 = vadd.f32 %v617_v12, %v557_v46  ;;  %2403 = vrcp.f32 %v839_v42  ;;  %v648_v57 = vmul.f32 %v2018_v32, %v2866_v39  ;;  %v2046_v31 = vld [vmem:[%s3433_s1 + $0x390] sm:$0xff]  ;;  %v2047_v44 = vld [vmem:[%s3433_s1 + $0x398] sm:$0xff] }
  0x63   : > { %v636_v13 = vadd.f32 %v632_v22, %v572_v47  ;;  %v637_v30 = vadd.f32 %v633_v62, %v573_v6  ;;  %v649_v58 = vmul.f32 %v2019_v35, %v2866_v39  ;;  %v664_v3 = vmul.f32 %v2022_v1, %v2869_v40  ;;  %v2050_v6 = vld [vmem:[%s3433_s1 + $0x3b0] sm:$0xff]  ;;  %v2055_v26 = vld [vmem:[%s3433_s1 + $0x3d8] sm:$0xff] }
  0x64   : > { %v665_v5 = vmul.f32 %v2023_v17, %v2869_v40  ;;  %v680_v8 = vmul.f32 %v2026_v11, %v2889_v55  ;;  %v652_v50 = vadd.f32 %v648_v57, %v588_v7  ;;  %v681_v41 = vmul.f32 %v2027_v18, %v2889_v55  ;;  %v2038_v40 = vld [vmem:[%s3433_s1 + $0x350] sm:$0xff]  ;;  %v2051_v7 = vld [vmem:[%s3433_s1 + $0x3b8] sm:$0xff] }
  0x65   : > { %v696_v34 = vmul.f32 %v2030_v54, %v2892_v56  ;;  %v697_v39 = vmul.f32 %v2031_v38, %v2892_v56  ;;  %v653_v14 = vadd.f32 %v649_v58, %v589_v15  ;;  %v668_v20 = vadd.f32 %v664_v3, %v604_v43  ;;  %v2043_v56 = vld [vmem:[%s3433_s1 + $0x378] sm:$0xff]  ;;  %v2058_v28 = vld [vmem:[%s3433_s1 + $0x3f0] sm:$0xff] }
  0x66   : > { %v669_v45 = vadd.f32 %v665_v5, %v605_v49  ;;  %v684_v55 = vadd.f32 %v680_v8, %v620_v52  ;;  %v685_v23 = vadd.f32 %v681_v41, %v621_v53  ;;  %v712_v46 = vmul.f32 %v2034_v10, %v2917_v16 }
  0x67   : > { %v700_v24 = vadd.f32 %v696_v34, %v636_v13  ;;  %v701_v59 = vadd.f32 %v697_v39, %v637_v30  ;;  %v713_v47 = vmul.f32 %v2035_v33, %v2917_v16  ;;  %v728_v0 = vmul.f32 %v2038_v40, %v2920_v19 }
  0x68   : > { %v729_v61 = vmul.f32 %v2039_v4, %v2920_v19  ;;  %v744_v60 = vmul.f32 %v2042_v51, %v2939_v36  ;;  %v716_v15 = vadd.f32 %v712_v46, %v652_v50  ;;  %v745_v9 = vmul.f32 %v2043_v56, %v2939_v36  ;;  %v2054_v19 = vld [vmem:[%s3433_s1 + $0x3d0] sm:$0xff] }
  0x69   : > { %v760_v27 = vmul.f32 %v2046_v31, %v2942_v37  ;;  %v761_v16 = vmul.f32 %v2047_v44, %v2942_v37  ;;  %v717_v29 = vadd.f32 %v713_v47, %v653_v14  ;;  %v732_v12 = vadd.f32 %v728_v0, %v668_v20  ;;  %v2059_v37 = vld [vmem:[%s3433_s1 + $0x3f8] sm:$0xff]  ;;  %v2389_v44 = vld [vmem:[%s3435_s3 + $0x8] sm:$0xff]  }
  0x6a   : > { %v733_v32 = vadd.f32 %v729_v61, %v669_v45  ;;  %v748_v36 = vadd.f32 %v744_v60, %v684_v55  ;;  %v749_v35 = vadd.f32 %v745_v9, %v685_v23  ;;  %v776_v22 = vmul.f32 %v2050_v6, %v2964_v63  ;;  %v2388_v55 = vld [vmem:[%s3435_s3] sm:$0xff]   ;;  %v2391_v0 = vld [vmem:[%s3435_s3 + $0x18] sm:$0xff]   ;;  %v2393_v9 = vld [vmem:[%s3435_s3 + $0x28] sm:$0xff]  }
  0x6b   : > { %v764_v42 = vadd.f32 %v760_v27, %v700_v24  ;;  %v765_v43 = vadd.f32 %v761_v16, %v701_v59  ;;  %v2402_v62 = vpop.eup %2401  ;;  %v777_v1 = vmul.f32 %v2051_v7, %v2964_v63  ;;  %v792_v17 = vmul.f32 %v2054_v19, %v2967_v2  ;;  %v2390_v59 = vld [vmem:[%s3435_s3 + $0x10] sm:$0xff]   ;;  %v2392_v6 = vld [vmem:[%s3435_s3 + $0x20] sm:$0xff]  }
  0x6c   : > { %v793_v11 = vmul.f32 %v2055_v26, %v2967_v2  ;;  %v808_v49 = vmul.f32 %v2058_v28, %v2989_v25  ;;  %v2404_v52 = vpop.eup %2403  ;;  %v850_v53 = vmul.f32 %v2402_v62, %v3058_v48  ;;  %v780_v18 = vadd.f32 %v776_v22, %v716_v15  ;;  %v2394_v19 = vld [vmem:[%s3435_s3 + $0x30] sm:$0xff]  }
  0x6d   : > { %v809_v54 = vmul.f32 %v2059_v37, %v2989_v25  ;;  %v851_v38 = vmul.f32 %v2404_v52, %v3060_v21  ;;  %v781_v13 = vadd.f32 %v777_v1, %v717_v29  ;;  %v796_v30 = vadd.f32 %v792_v17, %v732_v12  ;;  %v2395_v29 = vld [vmem:[%s3435_s3 + $0x38] sm:$0xff]   ;;  %v856_v37 = vld [vmem:[%s3436_s4] sm:$0xff] }
  0x6e   : > { %v797_v57 = vadd.f32 %v793_v11, %v733_v32  ;;  %v2449_v58 = vmov 0.0   ;;  %v812_v63 = vadd.f32 %v808_v49, %v748_v36  ;;  %v816_v2 = vadd.f32 %v780_v18, %v764_v42  ;;  %v2396_v36 = vld [vmem:[%s3435_s3 + $0x40] sm:$0xff]   ;;  %v857_v42 = vld [vmem:[%s3436_s4 + $0x8] sm:$0xff] }
  0x6f   : > { %2165 = vmatprep.subr.bf16.mxu0 %v2449_v58  ;;  %1408 = vst [vmem:[#allocation2] sm:$0xff] %v2449_v58  ;;  %1409 = vst [vmem:[#allocation2 + $0x8] sm:$0xff] %v2449_v58  ;;  %2237 = vmatprep.subr.bf16.mxu1 %v2449_v58  ;;  %v854_v48 = vpack.c.bf16 %v851_v38, %v850_v53  ;;  %v813_v3 = vadd.f32 %v809_v54, %v749_v35 }
  0x70   : > { %v817_v5 = vadd.f32 %v781_v13, %v765_v43  ;;  %2169 = vmatprep.mubr.msk.bf16.mxu0 %vm2450_vm0, %v2449_v58  ;;  %2239 = vmatprep.mubr.msk.bf16.mxu1 %vm2450_vm0, %v2449_v58  ;;  %v820_v25 = vadd.f32 %v816_v2, %v796_v30  ;;  %v2100_v13 = vld [vmem:[%s3439_s7] ss:$0 sm:$0xff] }
  0x71   : > { %922 = vrot.lane.b32.xlu0 %v854_v48, %s2451_s25  ;;  %982 = vrot.lane.b32.xlu1 %v854_v48, %s2452_s26 }
  0x72   : > { %v821_v21 = vadd.f32 %v817_v5, %v797_v57  ;;  %v824_v8 = vadd.f32 %v820_v25, %v812_v63  ;;  %2166 = vmatpush3.bf16.msra.mxu0 %v854_v48 }
  0x73   : > { %2167 = vmatprep.subr.bf16.mxu0 %v2449_v58 }
  0x74   : > { %v825_v10 = vadd.f32 %v821_v21, %v813_v3  ;;  %v2062_v33 = vmul.f32 -1.442695, %v824_v8 }
  0x76   : > { %v2063_v50 = vmul.f32 -1.442695, %v825_v10  ;;  %2405 = vpow2.f32 %v2062_v33 }
  0x78   : > { %2407 = vpow2.f32 %v2063_v50  ;;  %v2102_v50 = vld [vmem:[%s3437_s5 + $0x4] sm:$0xf] }
  0x80   : > { %v2406_v41 = vpop.eup %2405 }
  0x81   : > { %v840_v39 = vadd.f32 1.0, %v2406_v41 }
  0x82   : > { %v2408_v34 = vpop.eup %2407 }
  0x83   : > { %v841_v40 = vadd.f32 1.0, %v2408_v34  ;;  %2409 = vrcp.f32 %v840_v39  ;;  %v2104_v34 = vld [vmem:[%s3437_s5 + $0x8] sm:$0xf] }
  0x85   : > { %2411 = vrcp.f32 %v841_v40  ;;  %v2106_v40 = vld [vmem:[%s3437_s5 + $0xc] sm:$0xf] }
  0x8d   : > { %v2410_v4 = vpop.eup %2409 }
  0x8e   : > { %v852_v14 = vmul.f32 %v2410_v4, %v824_v8 }
  0x8f   : > { %v2412_v51 = vpop.eup %2411 }
  0x90   : > { %v853_v20 = vmul.f32 %v2412_v51, %v825_v10  ;;  %v1434_v10 = vld [vmem:[%s3437_s5] sm:$0xf]  ;;  %v2108_v51 = vld [vmem:[%s3437_s5 + $0x10] sm:$0xf] }
  0x92   : > { %v855_v45 = vpack.c.bf16 %v853_v20, %v852_v14  ;;  %v2110_v20 = vld [vmem:[%s3437_s5 + $0x14] sm:$0xf] }
  0x94   : > { %924 = vrot.lane.b32.xlu0 %v855_v45, %s2451_s25  ;;  %984 = vrot.lane.b32.xlu1 %v855_v45, %s2452_s26 }
  0x95   : > { %2168 = vmatpush3.bf16.msra.mxu0 %v855_v45 }
  0x96   : > { %2173 = vmatprep.subr.bf16.mxu0 %v2449_v58 }
  0x98   : > { %1042 = vrot.lane.b32.xlu0 %v854_v48, %s2453_s14  ;;  %1044 = vrot.lane.b32.xlu1 %v855_v45, %s2453_s14 }
  0x99   : > { %2170 = vmatmul.mubr.msk.bf16.vlgmr.msra.gmra.mrb[0].mxu0 %vm865_vm1, %v2388_v55  ;;  %v2112_v55 = vld [vmem:[%s3437_s5 + $0x18] sm:$0xf] }
  0x9a   : > { %2177 = vmatprep.mubr.msk.bf16.mxu0 %vm2450_vm0, %v2449_v58 }
  0x9c   : > { %1102 = vrot.lane.b32.xlu0 %v854_v48, %s2454_s29  ;;  %1104 = vrot.lane.b32.xlu1 %v855_v45, %s2454_s29 }
  0xa0   : > { %1162 = vrot.lane.b32.xlu0 %v854_v48, %s2455_s19  ;;  %1164 = vrot.lane.b32.xlu1 %v855_v45, %s2455_s19 }
  0xa4   : > { %1222 = vrot.lane.b32.xlu0 %v854_v48, %s2456_s16  ;;  %1224 = vrot.lane.b32.xlu1 %v855_v45, %s2456_s16 }
  0xa8   : > { %1282 = vrot.lane.b32.xlu0 %v854_v48, %s2457_s18  ;;  %1284 = vrot.lane.b32.xlu1 %v855_v45, %s2457_s18 }
  0xac   : > { %1342 = vrot.lane.b32.xlu0 %v854_v48, %s2458_s30  ;;  %1344 = vrot.lane.b32.xlu1 %v855_v45, %s2458_s30 }
  0xe3   : > { %v923_v56 = vpop.permute.xlu0 %922  ;;  %v983_v23 = vpop.permute.xlu1 %982 }
  0xe4   : > { %2174 = vmatpush3.bf16.msra.mxu0 %v923_v56 }
  0xe5   : > { %2175 = vmatprep.subr.bf16.mxu0 %v2449_v58 }
 0x106   : > { %v925_v31 = vpop.permute.xlu0 %924  ;;  %v985_v24 = vpop.permute.xlu1 %984 }
 0x107   : > { %2176 = vmatpush3.bf16.msra.mxu0 %v925_v31  ;;  %v2114_v31 = vld [vmem:[%s3437_s5 + $0x1c] sm:$0xf] }
 0x108   : > { %2181 = vmatprep.subr.bf16.mxu0 %v2449_v58 }
 0x10a   : > { %2178 = vmatmul.mubr.msk.bf16.vlgmr.msra.gmra.mrb[0].mxu0 %vm865_vm1, %v2389_v44  ;;  %v1043_v46 = vpop.permute.xlu0 %1042  ;;  %v1045_v47 = vpop.permute.xlu1 %1044 }
 0x10b   : > { %2182 = vmatpush3.bf16.msra.mxu0 %v983_v23  ;;  %2185 = vmatprep.mubr.msk.bf16.mxu0 %vm2450_vm0, %v2449_v58  ;;  %v2116_v23 = vld [vmem:[%s3437_s5 + $0x20] sm:$0xf] }
 0x10c   : > { %2183 = vmatprep.subr.bf16.mxu0 %v2449_v58 }
 0x10e   : > { %v1103_v61 = vpop.permute.xlu0 %1102  ;;  %v1105_v60 = vpop.permute.xlu1 %1104 }
 0x10f   : > { %2184 = vmatpush3.bf16.msra.mxu0 %v985_v24  ;;  %v1433_v24 = vld [vmem:[%s3438_s6] sm:$0xff] }
 0x110   : > { %2189 = vmatprep.subr.bf16.mxu0 %v2449_v58 }
 0x112   : > { %v1163_v7 = vpop.permute.xlu0 %1162  ;;  %v1165_v15 = vpop.permute.xlu1 %1164 }
 0x116   : > { %2186 = vmatmul.mubr.msk.bf16.vlgmr.msra.gmra.mrb[0].mxu0 %vm865_vm1, %v2390_v59  ;;  %v1223_v27 = vpop.permute.xlu0 %1222  ;;  %v1225_v16 = vpop.permute.xlu1 %1224 }
 0x117   : > { %2190 = vmatpush3.bf16.msra.mxu0 %v1043_v46  ;;  %2193 = vmatprep.mubr.msk.bf16.mxu0 %vm2450_vm0, %v2449_v58 }
 0x118   : > { %2191 = vmatprep.subr.bf16.mxu0 %v2449_v58 }
 0x11a   : > { %v1283_v26 = vpop.permute.xlu0 %1282  ;;  %v1285_v28 = vpop.permute.xlu1 %1284 }
 0x11b   : > { %2192 = vmatpush3.bf16.msra.mxu0 %v1045_v47 }
 0x11c   : > { %2197 = vmatprep.subr.bf16.mxu0 %v2449_v58 }
 0x11e   : > { %v1343_v12 = vpop.permute.xlu0 %1342  ;;  %v1345_v32 = vpop.permute.xlu1 %1344 }
 0x122   : > { %2194 = vmatmul.mubr.msk.bf16.vlgmr.msra.gmra.mrb[0].mxu0 %vm865_vm1, %v2391_v0 }
 0x123   : > { %2198 = vmatpush3.bf16.msra.mxu0 %v1103_v61  ;;  %2201 = vmatprep.mubr.msk.bf16.mxu0 %vm2450_vm0, %v2449_v58 }
 0x124   : > { %2199 = vmatprep.subr.bf16.mxu0 %v2449_v58 }
 0x127   : > { %2200 = vmatpush3.bf16.msra.mxu0 %v1105_v60 }
 0x128   : > { %2205 = vmatprep.subr.bf16.mxu0 %v2449_v58 }
 0x12e   : > { %2202 = vmatmul.mubr.msk.bf16.vlgmr.msra.gmra.mrb[0].mxu0 %vm865_vm1, %v2392_v6 }
 0x12f   : > { %2206 = vmatpush3.bf16.msra.mxu0 %v1163_v7  ;;  %2209 = vmatprep.mubr.msk.bf16.mxu0 %vm2450_vm0, %v2449_v58 }
 0x130   : > { %2207 = vmatprep.subr.bf16.mxu0 %v2449_v58 }
 0x133   : > { %2208 = vmatpush3.bf16.msra.mxu0 %v1165_v15 }
 0x134   : > { %2213 = vmatprep.subr.bf16.mxu0 %v2449_v58 }
 0x13a   : > { %2210 = vmatmul.mubr.msk.bf16.vlgmr.msra.gmra.mrb[0].mxu0 %vm865_vm1, %v2393_v9 }
 0x13b   : > { %2214 = vmatpush3.bf16.msra.mxu0 %v1223_v27  ;;  %2217 = vmatprep.mubr.msk.bf16.mxu0 %vm2450_vm0, %v2449_v58 }
 0x13c   : > { %2215 = vmatprep.subr.bf16.mxu0 %v2449_v58 }
 0x13f   : > { %2216 = vmatpush3.bf16.msra.mxu0 %v1225_v16 }
 0x140   : > { %2221 = vmatprep.subr.bf16.mxu0 %v2449_v58 }
 0x146   : > { %2218 = vmatmul.mubr.msk.bf16.vlgmr.msra.gmra.mrb[0].mxu0 %vm865_vm1, %v2394_v19 }
 0x147   : > { %2222 = vmatpush3.bf16.msra.mxu0 %v1283_v26  ;;  %2225 = vmatprep.mubr.msk.bf16.mxu0 %vm2450_vm0, %v2449_v58 }
 0x148   : > { %2223 = vmatprep.subr.bf16.mxu0 %v2449_v58 }
 0x14b   : > { %2224 = vmatpush3.bf16.msra.mxu0 %v1285_v28 }
 0x14c   : > { %2229 = vmatprep.subr.bf16.mxu0 %v2449_v58 }
 0x152   : > { %2226 = vmatmul.mubr.msk.bf16.vlgmr.msra.gmra.mrb[0].mxu0 %vm865_vm1, %v2395_v29 }
 0x153   : > { %2230 = vmatpush3.bf16.msra.mxu0 %v1343_v12  ;;  %2233 = vmatprep.mubr.msk.bf16.mxu0 %vm2450_vm0, %v2449_v58 }
 0x154   : > { %2231 = vmatprep.subr.bf16.mxu0 %v2449_v58 }
 0x157   : > { %2232 = vmatpush3.bf16.msra.mxu0 %v1345_v32 }
 0x15e   : > { %2234 = vmatmul.mubr.msk.bf16.vlgmr.msra.gmra.mrb[0].mxu0 %vm865_vm1, %v2396_v36 }
 0x231   : > { %v1385_v35 = vpop.f32.mrb[0].mxu0 }
 0x232   : > { %v2291_v43 = vadd.f32 %v1385_v35, %v856_v37  ;;  %v2235_v22 = vpop.f32.mrb[1].mxu0 }
 0x233   : > { %v1388_v62 = vpop.f32.mrb[2].mxu0 }
 0x234   : > { %v2098_v1 = vmul.f32 -1.442695, %v2291_v43  ;;  %v2292_v17 = vadd.f32 %v1388_v62, %v857_v42  ;;  %v2236_v11 = vpop.f32.mrb[3].mxu0 }
 0x236   : > { %2413 = vpow2.f32 %v2098_v1  ;;  %v2099_v49 = vmul.f32 -1.442695, %v2292_v17 }
 0x238   : > { %2415 = vpow2.f32 %v2099_v49 }
 0x240   : > { %v2414_v52 = vpop.eup %2413 }
 0x241   : > { %v1400_v53 = vadd.f32 1.0, %v2414_v52 }
 0x242   : > { %v2416_v18 = vpop.eup %2415 }
 0x243   : > { %2417 = vrcp.f32 %v1400_v53  ;;  %v1401_v54 = vadd.f32 1.0, %v2416_v18 }
 0x245   : > { %2419 = vrcp.f32 %v1401_v54 }
 0x24d   : > { %v2418_v38 = vpop.eup %2417 }
 0x24e   : > { %v1406_v30 = vmul.f32 %v2418_v38, %v2291_v43 }
 0x24f   : > { %v2420_v57 = vpop.eup %2419 }
 0x250   : > { %v1407_v63 = vmul.f32 %v2420_v57, %v2292_v17  ;;  %v1417_v2 = vmul.f32 %v2100_v13, %v1406_v30 }
 0x252   : > { %1421 = vrot.lane.b32.xlu0 %v1417_v2, %s2459_s10  ;;  %v1418_v48 = vmul.f32 %v2100_v13, %v1407_v63 }
 0x254   : > { %1423 = vrot.lane.b32.xlu1 %v1418_v48, %s2459_s10 }
 0x2c4   : > { %v1422_v3 = vpop.permute.xlu0 %1421 }
 0x2c5   : > { %1428 = vst.msk [vmem:[#allocation2] sm:$0xff] %vm1427_vm2, %v1422_v3 }
 0x2c6   : > { %v1424_v5 = vpop.permute.xlu1 %1423 }
 0x2c7   : > { %1429 = vst.msk [vmem:[#allocation2 + $0x8] sm:$0xff] %vm1427_vm2, %v1424_v5 }
 0x2cc   : > { %v1430_v25 = vld [vmem:[#allocation2] sm:$0xff] }
 0x2ce   : > { %v1431_v21 = vld [vmem:[#allocation2 + $0x8] sm:$0xff] }
 0x2cf   : > { %v1432_v8 = vpack.c.bf16 %v1431_v21, %v1430_v25 }
 0x2d1   : > { %1532 = vrot.lane.b32.xlu1 %v1432_v8, %s2452_s26  ;;  %1483 = vrot.lane.b32.xlu0 %v1432_v8, %s2451_s25  ;;  %s297_s26 = scalar_lea.vmem %s3440_s8, %s1934_s12 }
 0x2d2   : > { %2238 = vmatpush3.bf16.msra.mxu1 %v1432_v8 }
 0x2d3   : > { %2243 = vmatprep.subr.bf16.mxu1 %v2449_v58 }
 0x2d5   : > { %1630 = vrot.lane.b32.xlu1 %v1432_v8, %s2454_s29  ;;  %1581 = vrot.lane.b32.xlu0 %v1432_v8, %s2453_s14 }
 0x2d6   : > { %2240 = vmatmul.mubr.msk.bf16.vlgmr.msra.gmra.mrb[0].mxu1 %vm1435_vm3, %v1434_v10 }
 0x2d7   : > { %2245 = vmatprep.mubr.msk.bf16.mxu1 %vm2450_vm0, %v2449_v58 }
 0x2d9   : > { %1728 = vrot.lane.b32.xlu1 %v1432_v8, %s2456_s16  ;;  %1679 = vrot.lane.b32.xlu0 %v1432_v8, %s2455_s19 }
 0x2dd   : > { %1826 = vrot.lane.b32.xlu1 %v1432_v8, %s2458_s30  ;;  %1777 = vrot.lane.b32.xlu0 %v1432_v8, %s2457_s18 }
 0x343   : > { %v1484_v33 = vpop.permute.xlu0 %1483  ;;  %v1533_v41 = vpop.permute.xlu1 %1532 }
 0x344   : > { %2244 = vmatpush3.bf16.msra.mxu1 %v1484_v33 }
 0x345   : > { %2249 = vmatprep.subr.bf16.mxu1 %v2449_v58 }
 0x347   : > { %2246 = vmatmul.mubr.msk.bf16.vlgmr.msra.gmra.mrb[0].mxu1 %vm1435_vm3, %v2102_v50  ;;  %v1582_v39 = vpop.permute.xlu0 %1581  ;;  %v1631_v4 = vpop.permute.xlu1 %1630 }
 0x348   : > { %2250 = vmatpush3.bf16.msra.mxu1 %v1533_v41  ;;  %2251 = vmatprep.mubr.msk.bf16.mxu1 %vm2450_vm0, %v2449_v58 }
 0x349   : > { %2255 = vmatprep.subr.bf16.mxu1 %v2449_v58 }
 0x34b   : > { %v1680_v14 = vpop.permute.xlu0 %1679  ;;  %v1729_v45 = vpop.permute.xlu1 %1728 }
 0x34f   : > { %v1778_v56 = vpop.permute.xlu0 %1777  ;;  %v1827_v44 = vpop.permute.xlu1 %1826 }
 0x353   : > { %2252 = vmatmul.mubr.msk.bf16.vlgmr.msra.gmra.mrb[0].mxu1 %vm1435_vm3, %v2104_v34 }
 0x354   : > { %2256 = vmatpush3.bf16.msra.mxu1 %v1582_v39  ;;  %2257 = vmatprep.mubr.msk.bf16.mxu1 %vm2450_vm0, %v2449_v58 }
 0x355   : > { %2261 = vmatprep.subr.bf16.mxu1 %v2449_v58 }
 0x35f   : > { %2258 = vmatmul.mubr.msk.bf16.vlgmr.msra.gmra.mrb[0].mxu1 %vm1435_vm3, %v2106_v40 }
 0x360   : > { %2262 = vmatpush3.bf16.msra.mxu1 %v1631_v4  ;;  %2263 = vmatprep.mubr.msk.bf16.mxu1 %vm2450_vm0, %v2449_v58 }
 0x361   : > { %2267 = vmatprep.subr.bf16.mxu1 %v2449_v58 }
 0x36b   : > { %2264 = vmatmul.mubr.msk.bf16.vlgmr.msra.gmra.mrb[0].mxu1 %vm1435_vm3, %v2108_v51 }
 0x36c   : > { %2268 = vmatpush3.bf16.msra.mxu1 %v1680_v14  ;;  %2269 = vmatprep.mubr.msk.bf16.mxu1 %vm2450_vm0, %v2449_v58 }
 0x36d   : > { %2273 = vmatprep.subr.bf16.mxu1 %v2449_v58 }
 0x377   : > { %2270 = vmatmul.mubr.msk.bf16.vlgmr.msra.gmra.mrb[0].mxu1 %vm1435_vm3, %v2110_v20 }
 0x378   : > { %2274 = vmatpush3.bf16.msra.mxu1 %v1729_v45  ;;  %2275 = vmatprep.mubr.msk.bf16.mxu1 %vm2450_vm0, %v2449_v58 }
 0x379   : > { %2279 = vmatprep.subr.bf16.mxu1 %v2449_v58 }
 0x383   : > { %2276 = vmatmul.mubr.msk.bf16.vlgmr.msra.gmra.mrb[0].mxu1 %vm1435_vm3, %v2112_v55 }
 0x384   : > { %2280 = vmatpush3.bf16.msra.mxu1 %v1778_v56  ;;  %2281 = vmatprep.mubr.msk.bf16.mxu1 %vm2450_vm0, %v2449_v58 }
 0x385   : > { %2285 = vmatprep.subr.bf16.mxu1 %v2449_v58 }
 0x38f   : > { %2282 = vmatmul.mubr.msk.bf16.vlgmr.msra.gmra.mrb[0].mxu1 %vm1435_vm3, %v2114_v31 }
 0x390   : > { %2286 = vmatpush3.bf16.msra.mxu1 %v1827_v44  ;;  %2287 = vmatprep.mubr.msk.bf16.mxu1 %vm2450_vm0, %v2449_v58 }
 0x39b   : > { %2288 = vmatmul.mubr.msk.bf16.vlgmr.msra.gmra.mrb[0].mxu1 %vm1435_vm3, %v2116_v23 }
 0x46e   : > { %v1866_v59 = vpop.f32.mrb[0].mxu1 }
 0x46f   : > { %v2293_v58 = vadd.f32 %v1866_v59, %v1433_v24  ;;  %v2289_v46 = vpop.f32.mrb[1].mxu1 }
 0x470   : > { %v1869_v47 = vpop.f32.mrb[2].mxu1 }
 0x471   : > { %1874 = vst.msk [vmem:[%s297_s26] sm:$0xff] %vm1873_vm4, %v2293_v58  ;;  %v2290_v0 = vpop.f32.mrb[3].mxu1 }
 0x472 PF: > { %s19_s27 = sadd.s32 1, %s2446_s27  }
 0x473   : > { %p16_p1 = scmp.ge.s32.totalorder %s19_s27, 4  }
 0x475   :  { %18 = sbr.rel (!%p16_p1) target bundleno = 1 (0x1), region = 131 }
 0x47c   :  { %1894 = vsyncpa [#allocation4], 1 }
 0x47d   :  { %1896 = vsyncpa [#allocation4 + $0x1], 1 }

</bundles_post_ra>
